<compile_context>
chip_gen: v6e
topology: v6e:2x2x1
jax: 0.10.0
libtpu: 0.0.40
codegen_flags: <defaults>
</compile_context>

<pallas_src>
import functools

import jax
import jax.numpy as jnp
from jax.experimental import pallas as pl
from jax.experimental.pallas import tpu as pltpu

_VMEM_LIMIT = 32 * 1024 * 1024  # explicit scoped-VMEM budget; safe on v5e/v6e/v7x


# ---------------------------------------------------------------------------
# Kernel 1: fused 2-layer GCN on a block-diagonal A_hat.
#   H2[i] = A[i,i] @ (relu(A[i,i] @ (X[i] @ W1) + b1) @ W2) + b2
# grid = (row tiles [parallel]); only the diagonal A tiles are DMA'd.
# ---------------------------------------------------------------------------
def _gcn2_kernel(a_ref, x_ref, w1_ref, b1_ref, w2_ref, b2_ref, h2_ref):
    a = a_ref[...]                                   # (tm, tm) bf16 diagonal block

    # Layer 1: feature transform (once per tile), aggregate, bias, ReLU.
    xw1 = jnp.dot(x_ref[...], w1_ref[...], preferred_element_type=jnp.float32)
    h1 = jnp.dot(a, xw1.astype(jnp.bfloat16), preferred_element_type=jnp.float32)
    h1 = jnp.maximum(h1 + b1_ref[...], 0.0)
    # dropout(0.1) between layers is identity in eval mode.

    # Layer 2.
    xw2 = jnp.dot(h1.astype(jnp.bfloat16), w2_ref[...],
                  preferred_element_type=jnp.float32)
    h2 = jnp.dot(a, xw2.astype(jnp.bfloat16), preferred_element_type=jnp.float32)
    h2_ref[...] = (h2 + b2_ref[...]).astype(h2_ref.dtype)


def gcn2(a_hat, x, w1, b1, w2, b2, *, out_dtype, tm=128):
    n = a_hat.shape[0]
    f = x.shape[1]
    h = w1.shape[1]
    d = w2.shape[1]
    assert a_hat.shape == (n, n) and x.shape == (n, f)
    assert w1.shape == (f, h) and b1.shape == (1, h)
    assert w2.shape == (h, d) and b2.shape == (1, d)
    assert n % tm == 0

    return pl.pallas_call(
        _gcn2_kernel,
        out_shape=jax.ShapeDtypeStruct((n, d), out_dtype),
        grid_spec=pltpu.PrefetchScalarGridSpec(
            num_scalar_prefetch=0,
            grid=(n // tm,),
            in_specs=[
                # Diagonal A_hat tile only: off-diagonal (zero) tiles are never
                # fetched.  (If DMA on this stream were ever exposed, bump it to
                # pipeline_mode=pl.Buffered(3).)
                pl.BlockSpec((tm, tm), lambda i: (i, i)),
                pl.BlockSpec((tm, f), lambda i: (i, 0)),   # X row tile (bf16)
                pl.BlockSpec((f, h), lambda i: (0, 0)),    # W1 (constant block)
                pl.BlockSpec((1, h), lambda i: (0, 0)),    # b1
                pl.BlockSpec((h, d), lambda i: (0, 0)),    # W2
                pl.BlockSpec((1, d), lambda i: (0, 0)),    # b2
            ],
            out_specs=pl.BlockSpec((tm, d), lambda i: (i, 0)),
        ),
        compiler_params=pltpu.CompilerParams(
            dimension_semantics=("parallel",),             # megacore row split (v7x)
            vmem_limit_bytes=_VMEM_LIMIT,
        ),
    )(a_hat, x, w1, b1, w2, b2)


# ---------------------------------------------------------------------------
# Kernel 2: global mean + max pooling over nodes, grid over node-row tiles.
# Outputs (G, D) accumulate across tiles (lane-dense, D = 128).
# ---------------------------------------------------------------------------
def _graph_pool_kernel(mmean_ref, member_t_ref, h_ref, gap_ref, gmp_ref, *,
                       num_graphs):
    i = pl.program_id(0)
    neg = jnp.finfo(jnp.float32).min  # finite sentinel (documented contract)

    @pl.when(i == 0)
    def _():
        gap_ref[...] = jnp.zeros_like(gap_ref)
        gmp_ref[...] = jnp.full_like(gmp_ref, neg)

    h = h_ref[...].astype(jnp.float32)       # (TM, D) node features (bf16 input)
    mmean = mmean_ref[...]                   # (G, TM) f32 mean-pool weights
    member_t = member_t_ref[...]             # (TM, G) f32 0/1 membership

    # Global mean pool: (G, TM) @ (TM, D) on the MXU, accumulated in the output.
    gap_ref[...] += jnp.dot(mmean, h, preferred_element_type=jnp.float32)

    # Global max pool: small unrolled per-graph loop; live set stays at one
    # (TM, D) tile and the sublane reduce goes to the XLU (no (G, TM, D) blowup).
    rows = []
    for g in range(num_graphs):
        mask_g = member_t[:, g:g + 1] > 0.0                 # (TM, 1)
        hg = jnp.where(mask_g, h, neg)                      # (TM, D)
        rows.append(jnp.max(hg, axis=0, keepdims=True))     # (1, D)
    tile_max = jnp.concatenate(rows, axis=0)                # (G, D)
    gmp_ref[...] = jnp.maximum(gmp_ref[...], tile_max)


def graph_pool(mmean, member_t, h, *, num_graphs, tm=128):
    g, n = mmean.shape
    d = h.shape[1]
    assert g == num_graphs
    assert member_t.shape == (n, g)
    assert h.shape[0] == n and n % tm == 0

    kernel = functools.partial(_graph_pool_kernel, num_graphs=num_graphs)
    return pl.pallas_call(
        kernel,
        out_shape=(jax.ShapeDtypeStruct((g, d), jnp.float32),
                   jax.ShapeDtypeStruct((g, d), jnp.float32)),
        grid_spec=pltpu.PrefetchScalarGridSpec(
            num_scalar_prefetch=0,
            grid=(n // tm,),
            in_specs=[
                pl.BlockSpec((g, tm), lambda i: (0, i)),   # mean-pool columns
                pl.BlockSpec((tm, g), lambda i: (i, 0)),   # membership rows (0/1)
                pl.BlockSpec((tm, d), lambda i: (i, 0)),   # node-feature tile
            ],
            out_specs=[
                pl.BlockSpec((g, d), lambda i: (0, 0)),    # gap accumulator
                pl.BlockSpec((g, d), lambda i: (0, 0)),    # gmp accumulator
            ],
        ),
        compiler_params=pltpu.CompilerParams(
            dimension_semantics=("arbitrary",),            # outputs accumulate
            vmem_limit_bytes=_VMEM_LIMIT,
        ),
    )(mmean, member_t, h)


# ---------------------------------------------------------------------------
# Model wrapper
# ---------------------------------------------------------------------------
@functools.partial(jax.jit, static_argnames=("num_graphs", "tm"))
def gcn_model_forward(x_pad, a_hat, params, batch, num_graphs, *, tm=128):
    # bf16 matmul operands (halves A_hat / X HBM+VMEM traffic); f32 MXU accumulate.
    a_bf = a_hat.astype(jnp.bfloat16)

    # Fused 2-layer GCN; h2 emitted in bf16 (halves pool-kernel input traffic).
    h2 = gcn2(a_bf, x_pad.astype(jnp.bfloat16),
              params["w1"].astype(jnp.bfloat16), params["b1"],
              params["w2"].astype(jnp.bfloat16), params["b2"],
              out_dtype=jnp.bfloat16, tm=tm)

    # Graph-membership -> mean-pool matrix (G, N) and explicit 0/1 membership
    # (N, G) for the max pool (plain-JAX glue; tiny).
    one_hot = (batch[None, :] == jnp.arange(num_graphs)[:, None]).astype(jnp.float32)
    counts = jnp.maximum(one_hot.sum(axis=1, keepdims=True), 1.0)
    mmean = one_hot / counts
    member_t = one_hot.T

    gap_p, gmp_p = graph_pool(mmean, member_t, h2, num_graphs=num_graphs, tm=tm)

    # Tiny classifier stays in JAX as a split dot: equivalent to
    # cat((gap, gmp), dim=1) @ Wc + bc, without an in-kernel concat or a
    # lane-sparse (G, 1) Pallas store.
    return gap_p @ params["wc_gap"] + gmp_p @ params["wc_gmp"] + params["bc"]


def reference_forward(x_pad, a_hat, params, batch, num_graphs):
    """Pure-JAX f32 reference modelling the kernel's bf16 roundings."""
    rb = lambda t: t.astype(jnp.bfloat16).astype(jnp.float32)
    a = rb(a_hat)
    x = rb(x_pad)
    xw1 = x @ rb(params["w1"])
    h1 = jnp.maximum(a @ rb(xw1) + params["b1"], 0.0)
    xw2 = rb(h1) @ rb(params["w2"])
    h2 = rb(a @ rb(xw2) + params["b2"])               # h2 is emitted in bf16
    one_hot = (batch[None, :] == jnp.arange(num_graphs)[:, None]).astype(jnp.float32)
    counts = jnp.maximum(one_hot.sum(axis=1, keepdims=True), 1.0)
    gap = (one_hot / counts) @ h2
    gmp = jnp.max(jnp.where(one_hot[:, :, None] > 0, h2[None, :, :], -jnp.inf), axis=1)
    return gap @ params["wc_gap"] + gmp @ params["wc_gmp"] + params["bc"]


def build_normalized_adjacency(edge_index, num_nodes):
    """Dense D^-1/2 (A + I) D^-1/2 from an edge_index-style (2, E) array."""
    src, dst = edge_index
    adj = jnp.zeros((num_nodes, num_nodes), jnp.float32)
    adj = adj.at[src, dst].set(1.0)
    adj = adj.at[dst, src].set(1.0)                       # symmetrize
    adj = adj + jnp.eye(num_nodes, dtype=jnp.float32)     # self-loops
    adj = jnp.minimum(adj, 1.0)
    deg = adj.sum(axis=1)
    d_inv_sqrt = 1.0 / jnp.sqrt(jnp.maximum(deg, 1.0))
    return adj * d_inv_sqrt[:, None] * d_inv_sqrt[None, :]


if __name__ == "__main__":
    # Small synthetic problem: 8 graphs of 32 nodes each (N = 256 -> 2 row tiles
    # with TM = 128, so v7x still gets both TensorCores).
    NODES_PER_GRAPH = 32
    NUM_GRAPHS = 8
    N = NODES_PER_GRAPH * NUM_GRAPHS       # 256
    IN_DIM = 1                             # logical dims from the PyTorch module
    HIDDEN = 32
    OUT_DIM = 32
    F_PAD = 128                            # lane-dense padded dims (zero padding)
    H_PAD = 128
    D_PAD = 128
    TM = 128                               # raise to 256-512 for larger N

    key = jax.random.PRNGKey(0)
    k_x, k_w1, k_b1, k_w2, k_b2, k_wc, k_bc = jax.random.split(key, 7)

    # Node features (N, in_dim), zero-padded on the feature axis to 128 lanes.
    x = jax.random.normal(k_x, (N, IN_DIM), jnp.float32)
    x_pad = jnp.zeros((N, F_PAD), jnp.float32).at[:, :IN_DIM].set(x)

    # Deterministic edge_index: a ring inside each graph.
    src, dst = [], []
    for g in range(NUM_GRAPHS):
        off = g * NODES_PER_GRAPH
        for i in range(NODES_PER_GRAPH):
            src.append(off + i)
            dst.append(off + (i + 1) % NODES_PER_GRAPH)
    edge_index = jnp.array([src, dst], dtype=jnp.int32)
    a_hat = build_normalized_adjacency(edge_index, N)

    # The fused GCN kernel only fetches diagonal (TM, TM) tiles of A_hat; verify
    # A_hat really is block-diagonal at TM granularity (disjoint batched graphs
    # whose node ranges do not straddle tile boundaries).
    nt = N // TM
    blocks = a_hat.reshape(nt, TM, nt, TM)
    off_diag = jnp.abs(blocks) * (1.0 - jnp.eye(nt, dtype=jnp.float32))[:, None, :, None]
    assert float(jnp.max(off_diag)) == 0.0, "A_hat not block-diagonal at TM granularity"

    # Graph-membership vector (data.batch analogue).
    batch = jnp.repeat(jnp.arange(NUM_GRAPHS, dtype=jnp.int32), NODES_PER_GRAPH)

    # Logical parameters, then zero-padded to lane-aligned shapes.  Padded rows /
    # columns are zero so the padding is semantically inert.
    w1_l = jax.random.normal(k_w1, (IN_DIM, HIDDEN), jnp.float32) * 0.5
    b1_l = jax.random.normal(k_b1, (HIDDEN,), jnp.float32) * 0.1
    w2_l = jax.random.normal(k_w2, (HIDDEN, OUT_DIM), jnp.float32) * 0.2
    b2_l = jax.random.normal(k_b2, (OUT_DIM,), jnp.float32) * 0.1
    wc_l = jax.random.normal(k_wc, (2 * OUT_DIM, 1), jnp.float32) * 0.2
    bc_l = jax.random.normal(k_bc, (1, 1), jnp.float32) * 0.1

    params = {
        "w1": jnp.zeros((F_PAD, H_PAD), jnp.float32).at[:IN_DIM, :HIDDEN].set(w1_l),
        "b1": jnp.zeros((1, H_PAD), jnp.float32).at[0, :HIDDEN].set(b1_l),
        "w2": jnp.zeros((H_PAD, D_PAD), jnp.float32).at[:HIDDEN, :OUT_DIM].set(w2_l),
        "b2": jnp.zeros((1, D_PAD), jnp.float32).at[0, :OUT_DIM].set(b2_l),
        # nn.Linear(2*out_dim, 1) split into its gap / gmp halves (padded rows zero).
        "wc_gap": jnp.zeros((D_PAD, 1), jnp.float32).at[:OUT_DIM].set(wc_l[:OUT_DIM]),
        "wc_gmp": jnp.zeros((D_PAD, 1), jnp.float32).at[:OUT_DIM].set(wc_l[OUT_DIM:]),
        "bc": bc_l,
    }

    out = gcn_model_forward(x_pad, a_hat, params, batch, NUM_GRAPHS, tm=TM)
    out = jax.block_until_ready(out)
    assert out.shape == (NUM_GRAPHS, 1) and out.dtype == jnp.float32
    assert bool(jnp.all(jnp.isfinite(out)))

    ref = reference_forward(x_pad, a_hat, params, batch, NUM_GRAPHS)
    assert bool(jnp.allclose(out, ref, rtol=5e-2, atol=5e-2)), (out, ref)

    print("KERNEL_OK")
</pallas_src>

<mosaic_0001>
module attributes {stable_mosaic.version = 11 : i64} {
  func.func @_gcn2_kernel(%arg0: i32, %arg1: memref<128x128xbf16, #tpu.memory_space<vmem>>, %arg2: memref<128x128xbf16, #tpu.memory_space<vmem>>, %arg3: memref<128x128xbf16, #tpu.memory_space<vmem>>, %arg4: memref<1x128xf32, #tpu.memory_space<vmem>>, %arg5: memref<128x128xbf16, #tpu.memory_space<vmem>>, %arg6: memref<1x128xf32, #tpu.memory_space<vmem>>, %arg7: memref<128x128xbf16, #tpu.memory_space<vmem>>) attributes {dimension_semantics = [#tpu.dimension_semantics<parallel>], iteration_bounds = array<i64: 2>, scalar_prefetch = 0 : i64, scratch_operands = 0 : i64, tpu.core_type = #tpu.core_type<tc>, window_params = [{transform_indices = @transform_0, window_bounds = array<i64: 128, 128>}, {transform_indices = @transform_1, window_bounds = array<i64: 128, 128>}, {pipeline_mode = #tpu.pipeline_mode<synchronous>, transform_indices = @transform_2, window_bounds = array<i64: 128, 128>}, {pipeline_mode = #tpu.pipeline_mode<synchronous>, transform_indices = @transform_3, window_bounds = array<i64: 1, 128>}, {pipeline_mode = #tpu.pipeline_mode<synchronous>, transform_indices = @transform_4, window_bounds = array<i64: 128, 128>}, {pipeline_mode = #tpu.pipeline_mode<synchronous>, transform_indices = @transform_5, window_bounds = array<i64: 1, 128>}, {transform_indices = @transform_6, window_bounds = array<i64: 128, 128>}]} {
    %c0 = arith.constant 0 : index
    %c0_0 = arith.constant 0 : index
    %0 = vector.load %arg1[%c0, %c0_0] : memref<128x128xbf16, #tpu.memory_space<vmem>>, vector<128x128xbf16>
    %c0_1 = arith.constant 0 : index
    %c0_2 = arith.constant 0 : index
    %1 = vector.load %arg2[%c0_1, %c0_2] : memref<128x128xbf16, #tpu.memory_space<vmem>>, vector<128x128xbf16>
    %c0_3 = arith.constant 0 : index
    %c0_4 = arith.constant 0 : index
    %2 = vector.load %arg3[%c0_3, %c0_4] : memref<128x128xbf16, #tpu.memory_space<vmem>>, vector<128x128xbf16>
    %cst = arith.constant dense<0.000000e+00> : vector<128x128xf32>
    %3 = tpu.matmul %1, %2, %cst {dimension_numbers = #tpu.dot_dimension_numbers<[1], [0], [0], [1], [0, 0, 1, 1], [], []>} : vector<128x128xbf16>, vector<128x128xbf16>, vector<128x128xf32> -> vector<128x128xf32>
    %4 = arith.truncf %3 : vector<128x128xf32> to vector<128x128xbf16>
    %cst_5 = arith.constant dense<0.000000e+00> : vector<128x128xf32>
    %5 = tpu.matmul %0, %4, %cst_5 {dimension_numbers = #tpu.dot_dimension_numbers<[1], [0], [0], [1], [0, 0, 1, 1], [], []>} : vector<128x128xbf16>, vector<128x128xbf16>, vector<128x128xf32> -> vector<128x128xf32>
    %c0_6 = arith.constant 0 : index
    %c0_7 = arith.constant 0 : index
    %6 = vector.load %arg4[%c0_6, %c0_7] : memref<1x128xf32, #tpu.memory_space<vmem>>, vector<1x128xf32>
    %7 = vector.broadcast %6 : vector<1x128xf32> to vector<128x128xf32>
    %8 = arith.addf %5, %7 : vector<128x128xf32>
    %cst_8 = arith.constant 0.000000e+00 : f32
    %9 = vector.broadcast %cst_8 : f32 to vector<128x128xf32>
    %10 = arith.maximumf %8, %9 : vector<128x128xf32>
    %11 = arith.truncf %10 : vector<128x128xf32> to vector<128x128xbf16>
    %c0_9 = arith.constant 0 : index
    %c0_10 = arith.constant 0 : index
    %12 = vector.load %arg5[%c0_9, %c0_10] : memref<128x128xbf16, #tpu.memory_space<vmem>>, vector<128x128xbf16>
    %cst_11 = arith.constant dense<0.000000e+00> : vector<128x128xf32>
    %13 = tpu.matmul %11, %12, %cst_11 {dimension_numbers = #tpu.dot_dimension_numbers<[1], [0], [0], [1], [0, 0, 1, 1], [], []>} : vector<128x128xbf16>, vector<128x128xbf16>, vector<128x128xf32> -> vector<128x128xf32>
    %14 = arith.truncf %13 : vector<128x128xf32> to vector<128x128xbf16>
    %cst_12 = arith.constant dense<0.000000e+00> : vector<128x128xf32>
    %15 = tpu.matmul %0, %14, %cst_12 {dimension_numbers = #tpu.dot_dimension_numbers<[1], [0], [0], [1], [0, 0, 1, 1], [], []>} : vector<128x128xbf16>, vector<128x128xbf16>, vector<128x128xf32> -> vector<128x128xf32>
    %c0_13 = arith.constant 0 : index
    %c0_14 = arith.constant 0 : index
    %16 = vector.load %arg6[%c0_13, %c0_14] : memref<1x128xf32, #tpu.memory_space<vmem>>, vector<1x128xf32>
    %17 = vector.broadcast %16 : vector<1x128xf32> to vector<128x128xf32>
    %18 = arith.addf %15, %17 : vector<128x128xf32>
    %19 = arith.truncf %18 : vector<128x128xf32> to vector<128x128xbf16>
    %c0_15 = arith.constant 0 : index
    %c0_16 = arith.constant 0 : index
    %20 = vector.load %arg7[%c0_15, %c0_16] : memref<128x128xbf16, #tpu.memory_space<vmem>>, vector<128x128xbf16>
    tpu.vector_store %arg7[%c0_15, %c0_16], %19 {strides = array<i32>} : memref<128x128xbf16, #tpu.memory_space<vmem>>, vector<128x128xbf16>,
    return
  }
  func.func @transform_0(%arg0: i32) -> (i32, i32) {
    %c0_i32 = arith.constant 0 : i32
    return %arg0, %arg0 : i32, i32
  }
  func.func @transform_1(%arg0: i32) -> (i32, i32) {
    %c0_i32 = arith.constant 0 : i32
    %c0_i32_0 = arith.constant 0 : i32
    return %arg0, %c0_i32 : i32, i32
  }
  func.func @transform_2(%arg0: i32) -> (i32, i32) {
    %c0_i32 = arith.constant 0 : i32
    %c0_i32_0 = arith.constant 0 : i32
    %c0_i32_1 = arith.constant 0 : i32
    return %c0_i32, %c0_i32_0 : i32, i32
  }
  func.func @transform_3(%arg0: i32) -> (i32, i32) {
    %c0_i32 = arith.constant 0 : i32
    %c0_i32_0 = arith.constant 0 : i32
    %c0_i32_1 = arith.constant 0 : i32
    return %c0_i32, %c0_i32_0 : i32, i32
  }
  func.func @transform_4(%arg0: i32) -> (i32, i32) {
    %c0_i32 = arith.constant 0 : i32
    %c0_i32_0 = arith.constant 0 : i32
    %c0_i32_1 = arith.constant 0 : i32
    return %c0_i32, %c0_i32_0 : i32, i32
  }
  func.func @transform_5(%arg0: i32) -> (i32, i32) {
    %c0_i32 = arith.constant 0 : i32
    %c0_i32_0 = arith.constant 0 : i32
    %c0_i32_1 = arith.constant 0 : i32
    return %c0_i32, %c0_i32_0 : i32, i32
  }
  func.func @transform_6(%arg0: i32) -> (i32, i32) {
    %c0_i32 = arith.constant 0 : i32
    %c0_i32_0 = arith.constant 0 : i32
    return %arg0, %c0_i32 : i32, i32
  }
}

module attributes {stable_mosaic.version = 11 : i64} {
  func.func @_graph_pool_kernel(%arg0: i32, %arg1: memref<8x128xf32, #tpu.memory_space<vmem>>, %arg2: memref<128x8xf32, #tpu.memory_space<vmem>>, %arg3: memref<128x128xbf16, #tpu.memory_space<vmem>>, %arg4: memref<8x128xf32, #tpu.memory_space<vmem>>, %arg5: memref<8x128xf32, #tpu.memory_space<vmem>>) attributes {dimension_semantics = [#tpu.dimension_semantics<arbitrary>], iteration_bounds = array<i64: 2>, scalar_prefetch = 0 : i64, scratch_operands = 0 : i64, tpu.core_type = #tpu.core_type<tc>, window_params = [{transform_indices = @transform_0, window_bounds = array<i64: 8, 128>}, {transform_indices = @transform_1, window_bounds = array<i64: 128, 8>}, {transform_indices = @transform_2, window_bounds = array<i64: 128, 128>}, {pipeline_mode = #tpu.pipeline_mode<synchronous>, transform_indices = @transform_3, window_bounds = array<i64: 8, 128>}, {pipeline_mode = #tpu.pipeline_mode<synchronous>, transform_indices = @transform_4, window_bounds = array<i64: 8, 128>}]} {
    %c0_i32 = arith.constant 0 : i32
    %0 = arith.cmpi eq, %arg0, %c0_i32 : i32
    %1 = arith.extui %0 : i1 to i32
    %c0_i32_0 = arith.constant 0 : i32
    %2 = arith.cmpi ne, %1, %c0_i32_0 : i32
    scf.if %2 {
      %cst_38 = arith.constant 0.000000e+00 : f32
      %87 = vector.broadcast %cst_38 : f32 to vector<8x128xf32>
      %c0_39 = arith.constant 0 : index
      %c0_40 = arith.constant 0 : index
      %88 = vector.load %arg4[%c0_39, %c0_40] : memref<8x128xf32, #tpu.memory_space<vmem>>, vector<8x128xf32>
      tpu.vector_store %arg4[%c0_39, %c0_40], %87 {strides = array<i32>} : memref<8x128xf32, #tpu.memory_space<vmem>>, vector<8x128xf32>,
      %cst_41 = arith.constant -3.40282347E+38 : f32
      %89 = vector.broadcast %cst_41 : f32 to vector<8x128xf32>
      %c0_42 = arith.constant 0 : index
      %c0_43 = arith.constant 0 : index
      %90 = vector.load %arg5[%c0_42, %c0_43] : memref<8x128xf32, #tpu.memory_space<vmem>>, vector<8x128xf32>
      tpu.vector_store %arg5[%c0_42, %c0_43], %89 {strides = array<i32>} : memref<8x128xf32, #tpu.memory_space<vmem>>, vector<8x128xf32>,
    } else {
    }
    %c0 = arith.constant 0 : index
    %c0_1 = arith.constant 0 : index
    %3 = vector.load %arg3[%c0, %c0_1] : memref<128x128xbf16, #tpu.memory_space<vmem>>, vector<128x128xbf16>
    %4 = arith.extf %3 : vector<128x128xbf16> to vector<128x128xf32>
    %c0_2 = arith.constant 0 : index
    %c0_3 = arith.constant 0 : index
    %5 = vector.load %arg1[%c0_2, %c0_3] : memref<8x128xf32, #tpu.memory_space<vmem>>, vector<8x128xf32>
    %c0_4 = arith.constant 0 : index
    %c0_5 = arith.constant 0 : index
    %6 = vector.load %arg2[%c0_4, %c0_5] : memref<128x8xf32, #tpu.memory_space<vmem>>, vector<128x8xf32>
    %c0_6 = arith.constant 0 : index
    %c0_7 = arith.constant 0 : index
    %7 = vector.load %arg4[%c0_6, %c0_7] : memref<8x128xf32, #tpu.memory_space<vmem>>, vector<8x128xf32>
    %cst = arith.constant dense<0.000000e+00> : vector<8x128xf32>
    %8 = tpu.matmul %5, %4, %cst {dimension_numbers = #tpu.dot_dimension_numbers<[1], [0], [0], [1], [0, 0, 1, 1], [], []>} : vector<8x128xf32>, vector<128x128xf32>, vector<8x128xf32> -> vector<8x128xf32>
    %9 = arith.addf %7, %8 : vector<8x128xf32>
    %c0_8 = arith.constant 0 : index
    %c0_9 = arith.constant 0 : index
    %10 = vector.load %arg4[%c0_8, %c0_9] : memref<8x128xf32, #tpu.memory_space<vmem>>, vector<8x128xf32>
    tpu.vector_store %arg4[%c0_8, %c0_9], %9 {strides = array<i32>} : memref<8x128xf32, #tpu.memory_space<vmem>>, vector<8x128xf32>,
    %11 = vector.extract_strided_slice %6 {offsets = [0, 0], sizes = [128, 1], strides = [1, 1]} : vector<128x8xf32> to vector<128x1xf32>
    %cst_10 = arith.constant 0.000000e+00 : f32
    %12 = vector.broadcast %cst_10 : f32 to vector<128x1xf32>
    %13 = arith.cmpf ogt, %11, %12 : vector<128x1xf32>
    %cst_11 = arith.constant -3.40282347E+38 : f32
    %14 = vector.shape_cast %13 : vector<128x1xi1> to vector<128x1xi1>
    %15 = vector.broadcast %14 : vector<128x1xi1> to vector<128x128xi1>
    %16 = vector.broadcast %cst_11 : f32 to vector<128x128xf32>
    %17 = arith.select %15, %4, %16 : vector<128x128xi1>, vector<128x128xf32>
    %cst_12 = arith.constant dense<0xFF800000> : vector<128xf32>
    %18 = vector.multi_reduction <maximumf>, %17, %cst_12 [0] : vector<128x128xf32> to vector<128xf32>
    %19 = vector.shape_cast %18 : vector<128xf32> to vector<1x128xf32>
    %20 = vector.extract_strided_slice %6 {offsets = [0, 1], sizes = [128, 1], strides = [1, 1]} : vector<128x8xf32> to vector<128x1xf32>
    %cst_13 = arith.constant 0.000000e+00 : f32
    %21 = vector.broadcast %cst_13 : f32 to vector<128x1xf32>
    %22 = arith.cmpf ogt, %20, %21 : vector<128x1xf32>
    %cst_14 = arith.constant -3.40282347E+38 : f32
    %23 = vector.shape_cast %22 : vector<128x1xi1> to vector<128x1xi1>
    %24 = vector.broadcast %23 : vector<128x1xi1> to vector<128x128xi1>
    %25 = vector.broadcast %cst_14 : f32 to vector<128x128xf32>
    %26 = arith.select %24, %4, %25 : vector<128x128xi1>, vector<128x128xf32>
    %cst_15 = arith.constant dense<0xFF800000> : vector<128xf32>
    %27 = vector.multi_reduction <maximumf>, %26, %cst_15 [0] : vector<128x128xf32> to vector<128xf32>
    %28 = vector.shape_cast %27 : vector<128xf32> to vector<1x128xf32>
    %29 = vector.extract_strided_slice %6 {offsets = [0, 2], sizes = [128, 1], strides = [1, 1]} : vector<128x8xf32> to vector<128x1xf32>
    %cst_16 = arith.constant 0.000000e+00 : f32
    %30 = vector.broadcast %cst_16 : f32 to vector<128x1xf32>
    %31 = arith.cmpf ogt, %29, %30 : vector<128x1xf32>
    %cst_17 = arith.constant -3.40282347E+38 : f32
    %32 = vector.shape_cast %31 : vector<128x1xi1> to vector<128x1xi1>
    %33 = vector.broadcast %32 : vector<128x1xi1> to vector<128x128xi1>
    %34 = vector.broadcast %cst_17 : f32 to vector<128x128xf32>
    %35 = arith.select %33, %4, %34 : vector<128x128xi1>, vector<128x128xf32>
    %cst_18 = arith.constant dense<0xFF800000> : vector<128xf32>
    %36 = vector.multi_reduction <maximumf>, %35, %cst_18 [0] : vector<128x128xf32> to vector<128xf32>
    %37 = vector.shape_cast %36 : vector<128xf32> to vector<1x128xf32>
    %38 = vector.extract_strided_slice %6 {offsets = [0, 3], sizes = [128, 1], strides = [1, 1]} : vector<128x8xf32> to vector<128x1xf32>
    %cst_19 = arith.constant 0.000000e+00 : f32
    %39 = vector.broadcast %cst_19 : f32 to vector<128x1xf32>
    %40 = arith.cmpf ogt, %38, %39 : vector<128x1xf32>
    %cst_20 = arith.constant -3.40282347E+38 : f32
    %41 = vector.shape_cast %40 : vector<128x1xi1> to vector<128x1xi1>
    %42 = vector.broadcast %41 : vector<128x1xi1> to vector<128x128xi1>
    %43 = vector.broadcast %cst_20 : f32 to vector<128x128xf32>
    %44 = arith.select %42, %4, %43 : vector<128x128xi1>, vector<128x128xf32>
    %cst_21 = arith.constant dense<0xFF800000> : vector<128xf32>
    %45 = vector.multi_reduction <maximumf>, %44, %cst_21 [0] : vector<128x128xf32> to vector<128xf32>
    %46 = vector.shape_cast %45 : vector<128xf32> to vector<1x128xf32>
    %47 = vector.extract_strided_slice %6 {offsets = [0, 4], sizes = [128, 1], strides = [1, 1]} : vector<128x8xf32> to vector<128x1xf32>
    %cst_22 = arith.constant 0.000000e+00 : f32
    %48 = vector.broadcast %cst_22 : f32 to vector<128x1xf32>
    %49 = arith.cmpf ogt, %47, %48 : vector<128x1xf32>
    %cst_23 = arith.constant -3.40282347E+38 : f32
    %50 = vector.shape_cast %49 : vector<128x1xi1> to vector<128x1xi1>
    %51 = vector.broadcast %50 : vector<128x1xi1> to vector<128x128xi1>
    %52 = vector.broadcast %cst_23 : f32 to vector<128x128xf32>
    %53 = arith.select %51, %4, %52 : vector<128x128xi1>, vector<128x128xf32>
    %cst_24 = arith.constant dense<0xFF800000> : vector<128xf32>
    %54 = vector.multi_reduction <maximumf>, %53, %cst_24 [0] : vector<128x128xf32> to vector<128xf32>
    %55 = vector.shape_cast %54 : vector<128xf32> to vector<1x128xf32>
    %56 = vector.extract_strided_slice %6 {offsets = [0, 5], sizes = [128, 1], strides = [1, 1]} : vector<128x8xf32> to vector<128x1xf32>
    %cst_25 = arith.constant 0.000000e+00 : f32
    %57 = vector.broadcast %cst_25 : f32 to vector<128x1xf32>
    %58 = arith.cmpf ogt, %56, %57 : vector<128x1xf32>
    %cst_26 = arith.constant -3.40282347E+38 : f32
    %59 = vector.shape_cast %58 : vector<128x1xi1> to vector<128x1xi1>
    %60 = vector.broadcast %59 : vector<128x1xi1> to vector<128x128xi1>
    %61 = vector.broadcast %cst_26 : f32 to vector<128x128xf32>
    %62 = arith.select %60, %4, %61 : vector<128x128xi1>, vector<128x128xf32>
    %cst_27 = arith.constant dense<0xFF800000> : vector<128xf32>
    %63 = vector.multi_reduction <maximumf>, %62, %cst_27 [0] : vector<128x128xf32> to vector<128xf32>
    %64 = vector.shape_cast %63 : vector<128xf32> to vector<1x128xf32>
    %65 = vector.extract_strided_slice %6 {offsets = [0, 6], sizes = [128, 1], strides = [1, 1]} : vector<128x8xf32> to vector<128x1xf32>
    %cst_28 = arith.constant 0.000000e+00 : f32
    %66 = vector.broadcast %cst_28 : f32 to vector<128x1xf32>
    %67 = arith.cmpf ogt, %65, %66 : vector<128x1xf32>
    %cst_29 = arith.constant -3.40282347E+38 : f32
    %68 = vector.shape_cast %67 : vector<128x1xi1> to vector<128x1xi1>
    %69 = vector.broadcast %68 : vector<128x1xi1> to vector<128x128xi1>
    %70 = vector.broadcast %cst_29 : f32 to vector<128x128xf32>
    %71 = arith.select %69, %4, %70 : vector<128x128xi1>, vector<128x128xf32>
    %cst_30 = arith.constant dense<0xFF800000> : vector<128xf32>
    %72 = vector.multi_reduction <maximumf>, %71, %cst_30 [0] : vector<128x128xf32> to vector<128xf32>
    %73 = vector.shape_cast %72 : vector<128xf32> to vector<1x128xf32>
    %74 = vector.extract_strided_slice %6 {offsets = [0, 7], sizes = [128, 1], strides = [1, 1]} : vector<128x8xf32> to vector<128x1xf32>
    %cst_31 = arith.constant 0.000000e+00 : f32
    %75 = vector.broadcast %cst_31 : f32 to vector<128x1xf32>
    %76 = arith.cmpf ogt, %74, %75 : vector<128x1xf32>
    %cst_32 = arith.constant -3.40282347E+38 : f32
    %77 = vector.shape_cast %76 : vector<128x1xi1> to vector<128x1xi1>
    %78 = vector.broadcast %77 : vector<128x1xi1> to vector<128x128xi1>
    %79 = vector.broadcast %cst_32 : f32 to vector<128x128xf32>
    %80 = arith.select %78, %4, %79 : vector<128x128xi1>, vector<128x128xf32>
    %cst_33 = arith.constant dense<0xFF800000> : vector<128xf32>
    %81 = vector.multi_reduction <maximumf>, %80, %cst_33 [0] : vector<128x128xf32> to vector<128xf32>
    %82 = vector.shape_cast %81 : vector<128xf32> to vector<1x128xf32>
    %83 = tpu.concatenate %19, %28, %37, %46, %55, %64, %73, %82 in 0 : vector<1x128xf32>, vector<1x128xf32>, vector<1x128xf32>, vector<1x128xf32>, vector<1x128xf32>, vector<1x128xf32>, vector<1x128xf32>, vector<1x128xf32> -> vector<8x128xf32>
    %c0_34 = arith.constant 0 : index
    %c0_35 = arith.constant 0 : index
    %84 = vector.load %arg5[%c0_34, %c0_35] : memref<8x128xf32, #tpu.memory_space<vmem>>, vector<8x128xf32>
    %85 = arith.maximumf %84, %83 : vector<8x128xf32>
    %c0_36 = arith.constant 0 : index
    %c0_37 = arith.constant 0 : index
    %86 = vector.load %arg5[%c0_36, %c0_37] : memref<8x128xf32, #tpu.memory_space<vmem>>, vector<8x128xf32>
    tpu.vector_store %arg5[%c0_36, %c0_37], %85 {strides = array<i32>} : memref<8x128xf32, #tpu.memory_space<vmem>>, vector<8x128xf32>,
    return
  }
  func.func @transform_0(%arg0: i32) -> (i32, i32) {
    %c0_i32 = arith.constant 0 : i32
    %c0_i32_0 = arith.constant 0 : i32
    return %c0_i32, %arg0 : i32, i32
  }
  func.func @transform_1(%arg0: i32) -> (i32, i32) {
    %c0_i32 = arith.constant 0 : i32
    %c0_i32_0 = arith.constant 0 : i32
    return %arg0, %c0_i32 : i32, i32
  }
  func.func @transform_2(%arg0: i32) -> (i32, i32) {
    %c0_i32 = arith.constant 0 : i32
    %c0_i32_0 = arith.constant 0 : i32
    return %arg0, %c0_i32 : i32, i32
  }
  func.func @transform_3(%arg0: i32) -> (i32, i32) {
    %c0_i32 = arith.constant 0 : i32
    %c0_i32_0 = arith.constant 0 : i32
    %c0_i32_1 = arith.constant 0 : i32
    return %c0_i32, %c0_i32_0 : i32, i32
  }
  func.func @transform_4(%arg0: i32) -> (i32, i32) {
    %c0_i32 = arith.constant 0 : i32
    %c0_i32_0 = arith.constant 0 : i32
    %c0_i32_1 = arith.constant 0 : i32
    return %c0_i32, %c0_i32_0 : i32, i32
  }
}

</mosaic_0001>

<bundles_post_ra>
// kernel: gcn_model_forward.2
= control target key start
LH: loop header
LB: loop body
LE: loop exit
PB: predicated region body
PF: predicated region fallthrough
CT: control target
= control target key end

     0   :  { %s1676_s21 = smov 0   ;;  %s1678_s22 = smov 0   ;;  %s1873_s0 = inlined_call_operand.vmem [shape: bf16[256,256], index: 0, kind: input, shape index: {}]   ;;  %s1874_s1 = inlined_call_operand.vmem [shape: bf16[256,128], index: 1, kind: input, shape index: {}]   ;;  %s1875_s2 = inlined_call_operand.vmem [shape: bf16[128,128], index: 2, kind: input, shape index: {}]   ;;  %s1876_s3 = inlined_call_operand.vmem [shape: f32[1,128], index: 3, kind: input, shape index: {}]   ;;  %s1877_s4 = inlined_call_operand.vmem [shape: bf16[128,128], index: 4, kind: input, shape index: {}]   ;;  %s1878_s5 = inlined_call_operand.vmem [shape: f32[1,128], index: 5, kind: input, shape index: {}]   ;;  %s1879_s6 = inlined_call_operand.vmem [shape: bf16[256,128], index: 6, kind: output, shape index: {}]  }
   0x1   :  { %s1680_s23 = smov 0  }
   0x2 LB: > { %s1239_s24 = sadd.s32 4294967295, %s1639_s23   ;;  %s1693_s25 = sadd.s32 1, %s1639_s23   ;;  %s1639_s23 = sphi %s1680_s23, %s1882_s23   ;;  %s1635_s22 = sphi %s1678_s22, %s1881_s22   ;;  %s1631_s21 = sphi %s1676_s21, %s1880_s21  }
   0x3   : > { %s20_s26 = ssub.s32 %s1639_s23, %s1693_s25  ;;  %s25_s27 = sadd.s32 1, %s1635_s22 }
   0x4   : > { %s22_s28 = sor.u32 %s20_s26, %s20_s26  ;;  %p32_p0 = scmp.ne.s32.totalorder %s1635_s22, %s1631_s21 }
   0x5   : > { %p23_p1 = scmp.eq.s32.totalorder %s22_s28, 0  ;;  %p33_p2 = scmp.eq.s32.totalorder %s1639_s23, 0 }
   0x6   : > { %p1242_p4 = scmp.ge.s32.totalorder %s1639_s23, 2 }
   0x7   : > { %s1702_s29 = scalar_select %p23_p1, %s1635_s22, %s25_s27  }
   0x8   : > { %p34_p3 = por %p33_p2, %p32_p0  ;;  %206 = sbr.rel (%p1242_p4) target bundleno = 29 (0x1d), region = 32 }
   0xd   : > { %209 = sbr.rel (!%p34_p3) target bundleno = 29 (0x1d), region = 36  ;;  %s211_s30 = sand.u32 (%p34_p3), 1, %s1635_s22  }
   0xe   : > { %s1305_s7 = sshll.u32 (%p34_p3), %s1639_s23, 5  ;;  %s1243_s8 = sshll.u32 (%p34_p3), %s211_s30, 6 }
   0xf   : > { %s216_s9 = sadd.s32 (%p34_p3), %s1639_s23, %s1305_s7  ;;  %s213_s14 = scalar_lea.vmem (%p34_p3), [#allocation2], %s1243_s8 }
  0x10   : > { %s1246_s10 = sshll.u32 (%p34_p3), %s216_s9, 2 }
  0x11   : > { %s1711_s13 = scalar_lea.vmem (%p34_p3), %s1873_s0, %s1246_s10 }
  0x12   : > { %v235_v0 = vld [vmem:[%s1711_s13] sm:$0xf]  ;;  %v237_v1 = vld [vmem:[%s1711_s13 + $0x8] sm:$0xf]  ;;  %v239_v2 = vld [vmem:[%s1711_s13 + $0x10] sm:$0xf] }
  0x13   : > { %236 = vst [vmem:[%s213_s14] sm:$0xf] %v235_v0  ;;  %238 = vst [vmem:[%s213_s14 + $0x4] sm:$0xf] %v237_v1  ;;  %v241_v3 = vld [vmem:[%s1711_s13 + $0x18] sm:$0xf] }
  0x14   : > { %240 = vst [vmem:[%s213_s14 + $0x8] sm:$0xf] %v239_v2  ;;  %v243_v4 = vld [vmem:[%s1711_s13 + $0x20] sm:$0xf]  ;;  %v245_v5 = vld [vmem:[%s1711_s13 + $0x28] sm:$0xf] }
  0x15   : > { %242 = vst [vmem:[%s213_s14 + $0xc] sm:$0xf] %v241_v3  ;;  %244 = vst [vmem:[%s213_s14 + $0x10] sm:$0xf] %v243_v4  ;;  %v247_v6 = vld [vmem:[%s1711_s13 + $0x30] sm:$0xf] }
  0x16   : > { %246 = vst [vmem:[%s213_s14 + $0x14] sm:$0xf] %v245_v5  ;;  %v249_v7 = vld [vmem:[%s1711_s13 + $0x38] sm:$0xf]  ;;  %v251_v8 = vld [vmem:[%s1711_s13 + $0x40] sm:$0xf] }
  0x17   : > { %248 = vst [vmem:[%s213_s14 + $0x18] sm:$0xf] %v247_v6  ;;  %250 = vst [vmem:[%s213_s14 + $0x1c] sm:$0xf] %v249_v7  ;;  %v253_v9 = vld [vmem:[%s1711_s13 + $0x48] sm:$0xf] }
  0x18   : > { %252 = vst [vmem:[%s213_s14 + $0x20] sm:$0xf] %v251_v8  ;;  %v255_v10 = vld [vmem:[%s1711_s13 + $0x50] sm:$0xf]  ;;  %v257_v11 = vld [vmem:[%s1711_s13 + $0x58] sm:$0xf] }
  0x19   : > { %254 = vst [vmem:[%s213_s14 + $0x24] sm:$0xf] %v253_v9  ;;  %256 = vst [vmem:[%s213_s14 + $0x28] sm:$0xf] %v255_v10  ;;  %v259_v12 = vld [vmem:[%s1711_s13 + $0x60] sm:$0xf] }
  0x1a   : > { %258 = vst [vmem:[%s213_s14 + $0x2c] sm:$0xf] %v257_v11  ;;  %v261_v13 = vld [vmem:[%s1711_s13 + $0x68] sm:$0xf]  ;;  %v263_v14 = vld [vmem:[%s1711_s13 + $0x70] sm:$0xf] }
  0x1b   : > { %260 = vst [vmem:[%s213_s14 + $0x30] sm:$0xf] %v259_v12  ;;  %262 = vst [vmem:[%s213_s14 + $0x34] sm:$0xf] %v261_v13  ;;  %v265_v15 = vld [vmem:[%s1711_s13 + $0x78] sm:$0xf] }
  0x1c   : > { %264 = vst [vmem:[%s213_s14 + $0x38] sm:$0xf] %v263_v14  ;;  %266 = vst [vmem:[%s213_s14 + $0x3c] sm:$0xf] %v265_v15 }
  0x1d PF: > { %p1247_p5 = scmp.ge.s32.totalorder %s1639_s23, 1  ;;  %p330_p6 = scmp.lt.s32.totalorder %s1639_s23, 3 }
  0x1f   : > { %p331_p7 = pnand %p1247_p5, %p330_p6 }
  0x20   : > { %s1249_s17 = sshll.u32 (!%p331_p7), %s1239_s24, 4  ;;  %s337_s16 = sand.u32 (!%p331_p7), 1, %s1631_s21  }
  0x21   : > { %334 = sbr.rel (%p331_p7) target bundleno = 1015 (0x3f7), region = 81  ;;  %p373_p8 = scmp.lt.s32.totalorder (!%p331_p7), %s1249_s17, 31 }
  0x22   : > { %s1248_s18 = sshll.u32 (!%p331_p7), %s337_s16, 6 }
  0x23   : > { %s1776_s19 = scalar_lea.vmem (!%p331_p7), [#allocation2], %s1248_s18 }
  0x26   : > { %v1585_v16 = vld [vmem:[%s1875_s2 + $0x38] sm:$0xff]   ;;  %v1586_v17 = vld [vmem:[%s1875_s2 + $0x30] sm:$0xff]   ;;  %s1884_s17 = smov (!%p373_p8, %s1249_s17), 31  ;;  %v1587_v18 = vld [vmem:[%s1875_s2 + $0x28] sm:$0xff]  }
  0x27   : > { %1433 = vmatprep.subr.bf16.mxu0 %v1585_v16  ;;  %s1250_s27 = sshll.u32 %s1884_s17, 2  ;;  %v1588_v19 = vld [vmem:[%s1875_s2 + $0x20] sm:$0xff]   ;;  %v1589_v21 = vld [vmem:[%s1875_s2 + $0x18] sm:$0xff]   ;;  %v1590_v22 = vld [vmem:[%s1875_s2 + $0x10] sm:$0xff]  }
  0x28   : > { %1434 = vmatpush3.bf16.msra.mxu0 %v1585_v16  ;;  %s1750_s28 = scalar_lea.vmem %s1874_s1, %s1250_s27  ;;  %v1591_v23 = vld [vmem:[%s1875_s2 + $0x8] sm:$0xff]   ;;  %v1592_v24 = vld [vmem:[%s1875_s2] sm:$0xff]   ;;  %v1609_v33 = vld [vmem:[%s1877_s4 + $0x38] sm:$0xff]   ;;  %s1853_s24 = scalar_lea.vmem %s1879_s6, %s1250_s27 }
  0x29   : > { %1435 = vmatprep.subr.bf16.mxu0 %v1586_v17  ;;  %v1593_v20 = vld [vmem:[%s1750_s28] sm:$0xff]   ;;  %v1594_v25 = vld [vmem:[%s1750_s28 + $0x8] sm:$0xff]   ;;  %v1595_v26 = vld [vmem:[%s1750_s28 + $0x10] sm:$0xff]  }
  0x2a   : > { %1449 = vmatprep.mubr.bf16.mxu0 %v1593_v20  ;;  %v1596_v27 = vld [vmem:[%s1750_s28 + $0x18] sm:$0xff]   ;;  %v1597_v28 = vld [vmem:[%s1750_s28 + $0x20] sm:$0xff]   ;;  %v1598_v29 = vld [vmem:[%s1750_s28 + $0x28] sm:$0xff]  }
  0x2b   : > { %v1599_v30 = vld [vmem:[%s1750_s28 + $0x30] sm:$0xff]   ;;  %v1600_v31 = vld [vmem:[%s1750_s28 + $0x38] sm:$0xff]   ;;  %v1779_v32 = vld [vmem:[%s1776_s19] sm:$0xff]  }
  0x2c   : > { %1436 = vmatpush3.bf16.msra.mxu0 %v1586_v17  ;;  %1481 = vmatprep.mubr.bf16.mxu1 %v1779_v32  ;;  %v1610_v34 = vld [vmem:[%s1877_s4 + $0x30] sm:$0xff]   ;;  %v1611_v35 = vld [vmem:[%s1877_s4 + $0x28] sm:$0xff]   ;;  %v1612_v36 = vld [vmem:[%s1877_s4 + $0x20] sm:$0xff]  }
  0x2d   : > { %1437 = vmatprep.subr.bf16.mxu0 %v1587_v18  ;;  %v1613_v37 = vld [vmem:[%s1877_s4 + $0x18] sm:$0xff]   ;;  %v1798_v62 = vld [vmem:[%s1776_s19 + $0x8] sm:$0xff]   ;;  %v1801_v63 = vld [vmem:[%s1776_s19 + $0x10] sm:$0xff]  }
  0x2e   : > { %v1806_v0 = vld [vmem:[%s1776_s19 + $0x18] sm:$0xff]   ;;  %v1809_v1 = vld [vmem:[%s1776_s19 + $0x20] sm:$0xff]   ;;  %v1814_v2 = vld [vmem:[%s1776_s19 + $0x28] sm:$0xff]  }
  0x2f   : > { %v1817_v3 = vld [vmem:[%s1776_s19 + $0x30] sm:$0xff]   ;;  %v1822_v4 = vld [vmem:[%s1776_s19 + $0x38] sm:$0xff]   ;;  %v1615_v6 = vld [vmem:[%s1877_s4 + $0x8] sm:$0xff]  }
  0x30   : > { %1438 = vmatpush3.bf16.msra.mxu0 %v1587_v18  ;;  %v1614_v5 = vld [vmem:[%s1877_s4 + $0x10] sm:$0xff]   ;;  %v1616_v7 = vld [vmem:[%s1877_s4] sm:$0xff]  }
  0x31   : > { %1439 = vmatprep.subr.bf16.mxu0 %v1588_v19  ;;  %v1269_v10 = vld [vmem:[%s1876_s3] ss:$0 sm:$0xff] }
  0x34   : > { %1440 = vmatpush3.bf16.msra.mxu0 %v1588_v19 }
  0x35   : > { %1441 = vmatprep.subr.bf16.mxu0 %v1589_v21 }
  0x38   : > { %1442 = vmatpush3.bf16.msra.mxu0 %v1589_v21 }
  0x39   : > { %1443 = vmatprep.subr.bf16.mxu0 %v1590_v22 }
  0x3c   : > { %1444 = vmatpush3.bf16.msra.mxu0 %v1590_v22 }
  0x3d   : > { %1445 = vmatprep.subr.bf16.mxu0 %v1591_v23 }
  0x40   : > { %1446 = vmatpush3.bf16.msra.mxu0 %v1591_v23 }
  0x41   : > { %1447 = vmatprep.subr.bf16.mxu0 %v1592_v24 }
  0x44   : > { %1448 = vmatpush3.bf16.msra.mxu0 %v1592_v24 }
  0x45   : > { %1497 = vmatprep.subr.bf16.mxu0 %v1609_v33 }
  0x47   : > { %1450 = vmatmul.mubr.bf16.vlgmr.msra.gmra.mxu0 %v1594_v25 }
  0x48   : > { %1453 = vmatprep.mubr.bf16.mxu0 %v1595_v26  ;;  %1498 = vmatpush3.bf16.msra.mxu0 %v1609_v33 }
  0x49   : > { %1499 = vmatprep.subr.bf16.mxu0 %v1610_v34 }
  0x4c   : > { %1500 = vmatpush3.bf16.msra.mxu0 %v1610_v34 }
  0x4d   : > { %1501 = vmatprep.subr.bf16.mxu0 %v1611_v35 }
  0x4f   : > { %1454 = vmatmul.mubr.bf16.gmra.mxu0 %v1596_v27 }
  0x50   : > { %1457 = vmatprep.mubr.bf16.mxu0 %v1597_v28  ;;  %1502 = vmatpush3.bf16.msra.mxu0 %v1611_v35 }
  0x51   : > { %1503 = vmatprep.subr.bf16.mxu0 %v1612_v36 }
  0x54   : > { %1504 = vmatpush3.bf16.msra.mxu0 %v1612_v36 }
  0x55   : > { %1505 = vmatprep.subr.bf16.mxu0 %v1613_v37 }
  0x57   : > { %1458 = vmatmul.mubr.bf16.gmra.mxu0 %v1598_v29 }
  0x58   : > { %1461 = vmatprep.mubr.bf16.mxu0 %v1599_v30  ;;  %1506 = vmatpush3.bf16.msra.mxu0 %v1613_v37 }
  0x59   : > { %1507 = vmatprep.subr.bf16.mxu0 %v1614_v5 }
  0x5c   : > { %1508 = vmatpush3.bf16.msra.mxu0 %v1614_v5 }
  0x5d   : > { %1509 = vmatprep.subr.bf16.mxu0 %v1615_v6 }
  0x5f   : > { %1462 = vmatmul.mubr.bf16.gmra.mxu0 %v1600_v31 }
  0x60   : > { %1510 = vmatpush3.bf16.msra.mxu0 %v1615_v6 }
  0x61   : > { %1511 = vmatprep.subr.bf16.mxu0 %v1616_v7 }
  0x64   : > { %1512 = vmatpush3.bf16.msra.mxu0 %v1616_v7 }
 0x107   : > { %v1451_v38 = vpop.f32.mrf.mxu0 }
 0x109   : > { %v563_v39 = vpop.f32.mrf.mxu0 }
 0x10b   : > { %v1452_v40 = vpop.f32.mrf.mxu0 }
 0x10c   : > { %v627_v60 = vpack.c.bf16 %v1452_v40, %v1451_v38 }
 0x10d   : > { %v566_v41 = vpop.f32.mrf.mxu0 }
 0x10e   : > { %v626_v61 = vpack.c.bf16 %v566_v41, %v563_v39 }
 0x10f   : > { %v1455_v42 = vpop.f32.mrf.mxu0 }
 0x111   : > { %v579_v43 = vpop.f32.mrf.mxu0 }
 0x113   : > { %v1456_v44 = vpop.f32.mrf.mxu0 }
 0x114   : > { %v629_v58 = vpack.c.bf16 %v1456_v44, %v1455_v42 }
 0x115   : > { %v582_v45 = vpop.f32.mrf.mxu0 }
 0x116   : > { %v628_v59 = vpack.c.bf16 %v582_v45, %v579_v43 }
 0x117   : > { %v1459_v46 = vpop.f32.mrf.mxu0 }
 0x119   : > { %v595_v47 = vpop.f32.mrf.mxu0 }
 0x11b   : > { %v1460_v48 = vpop.f32.mrf.mxu0 }
 0x11c   : > { %v631_v56 = vpack.c.bf16 %v1460_v48, %v1459_v46 }
 0x11d   : > { %v598_v49 = vpop.f32.mrf.mxu0 }
 0x11e   : > { %v630_v57 = vpack.c.bf16 %v598_v49, %v595_v47 }
 0x11f   : > { %v1463_v50 = vpop.f32.mrf.mxu0 }
 0x121   : > { %v611_v51 = vpop.f32.mrf.mxu0 }
 0x123   : > { %v1464_v52 = vpop.f32.mrf.mxu0 }
 0x124   : > { %v633_v53 = vpack.c.bf16 %v1464_v52, %v1463_v50 }
 0x125   : > { %v614_v54 = vpop.f32.mrf.mxu0 }
 0x126   : > { %v632_v55 = vpack.c.bf16 %v614_v54, %v611_v51  ;;  %1465 = vmatprep.subr.bf16.mxu1 %v633_v53 }
 0x127   : > { %1466 = vmatpush3.bf16.msra.mxu1 %v633_v53 }
 0x128   : > { %1467 = vmatprep.subr.bf16.mxu1 %v632_v55 }
 0x12b   : > { %1468 = vmatpush3.bf16.msra.mxu1 %v632_v55 }
 0x12c   : > { %1469 = vmatprep.subr.bf16.mxu1 %v631_v56 }
 0x12f   : > { %1470 = vmatpush3.bf16.msra.mxu1 %v631_v56 }
 0x130   : > { %1471 = vmatprep.subr.bf16.mxu1 %v630_v57 }
 0x133   : > { %1472 = vmatpush3.bf16.msra.mxu1 %v630_v57 }
 0x134   : > { %1473 = vmatprep.subr.bf16.mxu1 %v629_v58 }
 0x137   : > { %1474 = vmatpush3.bf16.msra.mxu1 %v629_v58 }
 0x138   : > { %1475 = vmatprep.subr.bf16.mxu1 %v628_v59 }
 0x13b   : > { %1476 = vmatpush3.bf16.msra.mxu1 %v628_v59 }
 0x13c   : > { %1477 = vmatprep.subr.bf16.mxu1 %v627_v60 }
 0x13f   : > { %1478 = vmatpush3.bf16.msra.mxu1 %v627_v60 }
 0x140   : > { %1479 = vmatprep.subr.bf16.mxu1 %v626_v61 }
 0x143   : > { %1480 = vmatpush3.bf16.msra.mxu1 %v626_v61 }
 0x146   : > { %1482 = vmatmul.mubr.bf16.vlgmr.msra.gmra.mxu1 %v1798_v62 }
 0x147   : > { %1485 = vmatprep.mubr.bf16.mxu1 %v1801_v63 }
 0x14e   : > { %1486 = vmatmul.mubr.bf16.gmra.mxu1 %v1806_v0 }
 0x14f   : > { %1489 = vmatprep.mubr.bf16.mxu1 %v1809_v1 }
 0x156   : > { %1490 = vmatmul.mubr.bf16.gmra.mxu1 %v1814_v2 }
 0x157   : > { %1493 = vmatprep.mubr.bf16.mxu1 %v1817_v3 }
 0x15e   : > { %1494 = vmatmul.mubr.bf16.gmra.mxu1 %v1822_v4 }
 0x15f   : > { %1545 = vmatprep.mubr.bf16.mxu1 %v1779_v32 }
 0x206   : > { %v1483_v8 = vpop.f32.mrf.mxu1 }
 0x207   : > { %v732_v14 = vadd.f32 %v1483_v8, %v1269_v10 }
 0x208   : > { %v723_v9 = vpop.f32.mrf.mxu1 }
 0x209   : > { %v724_v12 = vadd.f32 %v1269_v10, %v723_v9  ;;  %v788_v21 = vmax.f32 %v732_v14, 0.0 }
 0x20a   : > { %v1484_v11 = vpop.f32.mrf.mxu1 }
 0x20b   : > { %v735_v13 = vadd.f32 %v1484_v11, %v1269_v10  ;;  %v786_v19 = vmax.f32 %v724_v12, 0.0 }
 0x20c   : > { %v726_v15 = vpop.f32.mrf.mxu1 }
 0x20d   : > { %v727_v16 = vadd.f32 %v1269_v10, %v726_v15  ;;  %v789_v17 = vmax.f32 %v735_v13, 0.0 }
 0x20e   : > { %v1487_v18 = vpop.f32.mrf.mxu1 }
 0x20f   : > { %v787_v20 = vmax.f32 %v727_v16, 0.0  ;;  %v803_v24 = vpack.c.bf16 %v789_v17, %v788_v21  ;;  %v748_v28 = vadd.f32 %v1487_v18, %v1269_v10 }
 0x210   : > { %v739_v22 = vpop.f32.mrf.mxu1 }
 0x211   : > { %v802_v23 = vpack.c.bf16 %v787_v20, %v786_v19  ;;  %v740_v26 = vadd.f32 %v1269_v10, %v739_v22  ;;  %v792_v35 = vmax.f32 %v748_v28, 0.0 }
 0x212   : > { %v1488_v25 = vpop.f32.mrf.mxu1 }
 0x213   : > { %v751_v27 = vadd.f32 %v1488_v25, %v1269_v10  ;;  %1513 = vmatprep.mubr.bf16.mxu0 %v802_v23  ;;  %v790_v33 = vmax.f32 %v740_v26, 0.0 }
 0x214   : > { %v742_v29 = vpop.f32.mrf.mxu1  ;;  %1514 = vmatmul.mubr.bf16.vlgmr.msra.gmra.mxu0 %v803_v24 }
 0x215   : > { %v743_v30 = vadd.f32 %v1269_v10, %v742_v29  ;;  %v793_v31 = vmax.f32 %v751_v27, 0.0 }
 0x216   : > { %v1491_v32 = vpop.f32.mrf.mxu1 }
 0x217   : > { %v791_v34 = vmax.f32 %v743_v30, 0.0  ;;  %v805_v38 = vpack.c.bf16 %v793_v31, %v792_v35  ;;  %v764_v42 = vadd.f32 %v1491_v32, %v1269_v10 }
 0x218   : > { %v755_v36 = vpop.f32.mrf.mxu1 }
 0x219   : > { %v804_v37 = vpack.c.bf16 %v791_v34, %v790_v33  ;;  %v756_v40 = vadd.f32 %v1269_v10, %v755_v36  ;;  %v796_v49 = vmax.f32 %v764_v42, 0.0  ;;  %v1286_v33 = vld [vmem:[%s1878_s5] ss:$0 sm:$0xff] }
 0x21a   : > { %v1492_v39 = vpop.f32.mrf.mxu1 }
 0x21b   : > { %v767_v41 = vadd.f32 %v1492_v39, %v1269_v10  ;;  %1517 = vmatprep.mubr.bf16.mxu0 %v804_v37  ;;  %v794_v47 = vmax.f32 %v756_v40, 0.0 }
 0x21c   : > { %v758_v43 = vpop.f32.mrf.mxu1  ;;  %1518 = vmatmul.mubr.bf16.gmra.mxu0 %v805_v38 }
 0x21d   : > { %v759_v44 = vadd.f32 %v1269_v10, %v758_v43  ;;  %v797_v45 = vmax.f32 %v767_v41, 0.0 }
 0x21e   : > { %v1495_v46 = vpop.f32.mrf.mxu1 }
 0x21f   : > { %v795_v48 = vmax.f32 %v759_v44, 0.0  ;;  %v807_v52 = vpack.c.bf16 %v797_v45, %v796_v49  ;;  %v780_v56 = vadd.f32 %v1495_v46, %v1269_v10 }
 0x220   : > { %v771_v50 = vpop.f32.mrf.mxu1 }
 0x221   : > { %v806_v51 = vpack.c.bf16 %v795_v48, %v794_v47  ;;  %v772_v54 = vadd.f32 %v1269_v10, %v771_v50  ;;  %v800_v5 = vmax.f32 %v780_v56, 0.0 }
 0x222   : > { %v1496_v53 = vpop.f32.mrf.mxu1 }
 0x223   : > { %v783_v55 = vadd.f32 %v1496_v53, %v1269_v10  ;;  %1521 = vmatprep.mubr.bf16.mxu0 %v806_v51  ;;  %v798_v60 = vmax.f32 %v772_v54, 0.0 }
 0x224   : > { %v774_v57 = vpop.f32.mrf.mxu1  ;;  %1522 = vmatmul.mubr.bf16.gmra.mxu0 %v807_v52 }
 0x225   : > { %v775_v58 = vadd.f32 %v1269_v10, %v774_v57  ;;  %v801_v59 = vmax.f32 %v783_v55, 0.0 }
 0x227   : > { %v799_v61 = vmax.f32 %v775_v58, 0.0  ;;  %v809_v7 = vpack.c.bf16 %v801_v59, %v800_v5 }
 0x229   : > { %v808_v6 = vpack.c.bf16 %v799_v61, %v798_v60 }
 0x22b   : > { %1525 = vmatprep.mubr.bf16.mxu0 %v808_v6 }
 0x22c   : > { %1526 = vmatmul.mubr.bf16.gmra.mxu0 %v809_v7 }
 0x2d4   : > { %v1515_v8 = vpop.f32.mrf.mxu0 }
 0x2d6   : > { %v908_v9 = vpop.f32.mrf.mxu0 }
 0x2d8   : > { %v1516_v11 = vpop.f32.mrf.mxu0 }
 0x2d9   : > { %v972_v30 = vpack.c.bf16 %v1516_v11, %v1515_v8 }
 0x2da   : > { %v911_v12 = vpop.f32.mrf.mxu0 }
 0x2db   : > { %v971_v31 = vpack.c.bf16 %v911_v12, %v908_v9 }
 0x2dc   : > { %v1519_v13 = vpop.f32.mrf.mxu0 }
 0x2de   : > { %v924_v14 = vpop.f32.mrf.mxu0 }
 0x2e0   : > { %v1520_v15 = vpop.f32.mrf.mxu0 }
 0x2e1   : > { %v974_v28 = vpack.c.bf16 %v1520_v15, %v1519_v13 }
 0x2e2   : > { %v927_v16 = vpop.f32.mrf.mxu0 }
 0x2e3   : > { %v973_v29 = vpack.c.bf16 %v927_v16, %v924_v14 }
 0x2e4   : > { %v1523_v17 = vpop.f32.mrf.mxu0 }
 0x2e6   : > { %v940_v18 = vpop.f32.mrf.mxu0 }
 0x2e8   : > { %v1524_v19 = vpop.f32.mrf.mxu0 }
 0x2e9   : > { %v976_v26 = vpack.c.bf16 %v1524_v19, %v1523_v17 }
 0x2ea   : > { %v943_v10 = vpop.f32.mrf.mxu0 }
 0x2eb   : > { %v975_v27 = vpack.c.bf16 %v943_v10, %v940_v18 }
 0x2ec   : > { %v1527_v20 = vpop.f32.mrf.mxu0 }
 0x2ee   : > { %v956_v21 = vpop.f32.mrf.mxu0 }
 0x2f0   : > { %v1528_v22 = vpop.f32.mrf.mxu0 }
 0x2f1   : > { %v978_v23 = vpack.c.bf16 %v1528_v22, %v1527_v20 }
 0x2f2   : > { %v959_v24 = vpop.f32.mrf.mxu0 }
 0x2f3   : > { %v977_v25 = vpack.c.bf16 %v959_v24, %v956_v21  ;;  %1529 = vmatprep.subr.bf16.mxu1 %v978_v23 }
 0x2f4   : > { %1530 = vmatpush3.bf16.msra.mxu1 %v978_v23 }
 0x2f5   : > { %1531 = vmatprep.subr.bf16.mxu1 %v977_v25 }
 0x2f8   : > { %1532 = vmatpush3.bf16.msra.mxu1 %v977_v25 }
 0x2f9   : > { %1533 = vmatprep.subr.bf16.mxu1 %v976_v26 }
 0x2fc   : > { %1534 = vmatpush3.bf16.msra.mxu1 %v976_v26 }
 0x2fd   : > { %1535 = vmatprep.subr.bf16.mxu1 %v975_v27 }
 0x300   : > { %1536 = vmatpush3.bf16.msra.mxu1 %v975_v27 }
 0x301   : > { %1537 = vmatprep.subr.bf16.mxu1 %v974_v28 }
 0x304   : > { %1538 = vmatpush3.bf16.msra.mxu1 %v974_v28 }
 0x305   : > { %1539 = vmatprep.subr.bf16.mxu1 %v973_v29 }
 0x308   : > { %1540 = vmatpush3.bf16.msra.mxu1 %v973_v29 }
 0x309   : > { %1541 = vmatprep.subr.bf16.mxu1 %v972_v30 }
 0x30c   : > { %1542 = vmatpush3.bf16.msra.mxu1 %v972_v30 }
 0x30d   : > { %1543 = vmatprep.subr.bf16.mxu1 %v971_v31 }
 0x310   : > { %1544 = vmatpush3.bf16.msra.mxu1 %v971_v31 }
 0x313   : > { %1546 = vmatmul.mubr.bf16.vlgmr.msra.gmra.mxu1 %v1798_v62 }
 0x314   : > { %1549 = vmatprep.mubr.bf16.mxu1 %v1801_v63 }
 0x31b   : > { %1550 = vmatmul.mubr.bf16.gmra.mxu1 %v1806_v0 }
 0x31c   : > { %1553 = vmatprep.mubr.bf16.mxu1 %v1809_v1 }
 0x323   : > { %1554 = vmatmul.mubr.bf16.gmra.mxu1 %v1814_v2 }
 0x324   : > { %1557 = vmatprep.mubr.bf16.mxu1 %v1817_v3 }
 0x32b   : > { %1558 = vmatmul.mubr.bf16.gmra.mxu1 %v1822_v4 }
 0x3d3   : > { %v1547_v32 = vpop.f32.mrf.mxu1 }
 0x3d4   : > { %v1029_v62 = vadd.f32 %v1547_v32, %v1286_v33 }
 0x3d5   : > { %v1020_v34 = vpop.f32.mrf.mxu1 }
 0x3d6   : > { %v1021_v0 = vadd.f32 %v1286_v33, %v1020_v34 }
 0x3d7   : > { %v1548_v35 = vpop.f32.mrf.mxu1 }
 0x3d8   : > { %v1032_v36 = vadd.f32 %v1548_v35, %v1286_v33 }
 0x3d9   : > { %v1023_v63 = vpop.f32.mrf.mxu1 }
 0x3da   : > { %v1330_v1 = vpack.c.bf16 %v1032_v36, %v1029_v62  ;;  %v1024_v2 = vadd.f32 %v1286_v33, %v1023_v63 }
 0x3db   : > { %v1551_v3 = vpop.f32.mrf.mxu1 }
 0x3dc   : > { %1362 = vst [vmem:[%s1853_s24 + $0x8] sm:$0xff] %v1330_v1   ;;  %v1325_v4 = vpack.c.bf16 %v1024_v2, %v1021_v0  ;;  %v1045_v39 = vadd.f32 %v1551_v3, %v1286_v33 }
 0x3dd   : > { %v1036_v37 = vpop.f32.mrf.mxu1 }
 0x3de   : > { %1326 = vst [vmem:[%s1853_s24] sm:$0xff] %v1325_v4   ;;  %v1037_v42 = vadd.f32 %v1286_v33, %v1036_v37 }
 0x3df   : > { %v1552_v38 = vpop.f32.mrf.mxu1 }
 0x3e0   : > { %v1048_v40 = vadd.f32 %v1552_v38, %v1286_v33 }
 0x3e1   : > { %v1039_v41 = vpop.f32.mrf.mxu1 }
 0x3e2   : > { %v1340_v43 = vpack.c.bf16 %v1048_v40, %v1045_v39  ;;  %v1040_v44 = vadd.f32 %v1286_v33, %v1039_v41 }
 0x3e3   : > { %v1555_v45 = vpop.f32.mrf.mxu1 }
 0x3e4   : > { %1364 = vst [vmem:[%s1853_s24 + $0x18] sm:$0xff] %v1340_v43   ;;  %v1335_v46 = vpack.c.bf16 %v1040_v44, %v1037_v42  ;;  %v1061_v49 = vadd.f32 %v1555_v45, %v1286_v33 }
 0x3e5   : > { %v1052_v47 = vpop.f32.mrf.mxu1 }
 0x3e6   : > { %1363 = vst [vmem:[%s1853_s24 + $0x10] sm:$0xff] %v1335_v46   ;;  %v1053_v52 = vadd.f32 %v1286_v33, %v1052_v47 }
 0x3e7   : > { %v1556_v48 = vpop.f32.mrf.mxu1 }
 0x3e8   : > { %v1064_v50 = vadd.f32 %v1556_v48, %v1286_v33 }
 0x3e9   : > { %v1055_v51 = vpop.f32.mrf.mxu1 }
 0x3ea   : > { %v1350_v53 = vpack.c.bf16 %v1064_v50, %v1061_v49  ;;  %v1056_v54 = vadd.f32 %v1286_v33, %v1055_v51 }
 0x3eb   : > { %v1559_v55 = vpop.f32.mrf.mxu1 }
 0x3ec   : > { %1366 = vst [vmem:[%s1853_s24 + $0x28] sm:$0xff] %v1350_v53   ;;  %v1345_v56 = vpack.c.bf16 %v1056_v54, %v1053_v52  ;;  %v1077_v59 = vadd.f32 %v1559_v55, %v1286_v33 }
 0x3ed   : > { %v1068_v57 = vpop.f32.mrf.mxu1 }
 0x3ee   : > { %1365 = vst [vmem:[%s1853_s24 + $0x20] sm:$0xff] %v1345_v56   ;;  %v1069_v5 = vadd.f32 %v1286_v33, %v1068_v57 }
 0x3ef   : > { %v1560_v58 = vpop.f32.mrf.mxu1 }
 0x3f0   : > { %v1080_v60 = vadd.f32 %v1560_v58, %v1286_v33 }
 0x3f1   : > { %v1071_v61 = vpop.f32.mrf.mxu1 }
 0x3f2   : > { %v1360_v6 = vpack.c.bf16 %v1080_v60, %v1077_v59  ;;  %v1072_v7 = vadd.f32 %v1286_v33, %v1071_v61 }
 0x3f4   : > { %1368 = vst [vmem:[%s1853_s24 + $0x38] sm:$0xff] %v1360_v6   ;;  %v1355_v8 = vpack.c.bf16 %v1072_v7, %v1069_v5 }
 0x3f6   : > { %1367 = vst [vmem:[%s1853_s24 + $0x30] sm:$0xff] %v1355_v8  }
 0x3f7 PF: > { %p13_p9 = scmp.ge.s32.totalorder %s1693_s25, 4   ;;  %s1880_s21 = smov %s1635_s22 }
 0x3f8   : > { %s1881_s22 = smov %s1702_s29  ;;  %s1882_s23 = smov %s1693_s25 }
 0x3f9   :  { %15 = sbr.rel (!%p13_p9) target bundleno = 2 (0x2), region = 123 }

// kernel: gcn_model_forward.3
= control target key start
LH: loop header
LB: loop body
LE: loop exit
PB: predicated region body
PF: predicated region fallthrough
CT: control target
= control target key end

     0   :  { %s1453_s15 = smov 0   ;;  %s1981_s0 = inlined_call_operand.vmem [shape: f32[8,256], index: 0, kind: input, shape index: {}]   ;;  %s1982_s1 = inlined_call_operand.vmem [shape: f32[256,8], index: 1, kind: input, shape index: {}]   ;;  %s1983_s2 = inlined_call_operand.vmem [shape: bf16[256,128], index: 2, kind: input, shape index: {}]   ;;  %s1984_s3 = inlined_call_operand.vmem [shape: f32[8,128], index: 3, kind: output, shape index: {0}]   ;;  %s1985_s4 = inlined_call_operand.vmem [shape: f32[8,128], index: 4, kind: output, shape index: {1}]  }
   0x1 LB: > { %s1265_s16 = sadd.s32 4294967295, %s1414_s15   ;;  %p1268_p0 = scmp.ge.s32.totalorder %s1414_s15, 1  ;;  %s1414_s15 = sphi %s1453_s15, %s15_s15  }
   0x2   : > { %p176_p1 = scmp.lt.s32.totalorder %s1414_s15, 3 }
   0x4   : > { %p177_p2 = pnand %p1268_p0, %p176_p1 }
   0x6   : > { %180 = sbr.rel (%p177_p2) target bundleno = 455 (0x1c7), region = 32 }
   0xb   : > { %p206_p3 = scmp.lt.s32.totalorder %s1265_s16, 1  ;;  %s1270_s17 = sshll.u32 %s1265_s16, 4 }
   0xc   : > { %p211_p4 = scmp.lt.s32.totalorder %s1270_s17, 31  ;;  %p1274_p5 = scmp.ne.s32.totalorder %s1265_s16, 0 }
   0xd   : > { %s207_s18 = scalar_select %p206_p3, %s1265_s16, 1 }
   0xe   : > { %s2007_s17 = smov (!%p211_p4, %s1270_s17), 31  ;;  %225 = sbr.rel (%p1274_p5) target bundleno = 21 (0x15), region = 36 }
   0xf   : > { %s1269_s19 = sshll.u32 %s207_s18, 3  ;;  %s1271_s23 = sshll.u32 %s2007_s17, 3 }
  0x10   : > { %s1464_s22 = scalar_lea.vmem %s1981_s0, %s1269_s19  ;;  %s1469_s26 = scalar_lea.vmem %s1982_s1, %s1271_s23 }
  0x11   : > { %s1273_s27 = sshll.u32 %s2007_s17, 2 }
  0x12   : > { %s1474_s30 = scalar_lea.vmem %s1983_s2, %s1273_s27 }
  0x13   : > { %v1416_v0 = vmov 0.0   ;;  %v1417_v1 = vmov -3.4028235e+38  }
  0x14   : > { %226 = vst [vmem:[%s1984_s3] sm:$0xff] %v1416_v0  ;;  %227 = vst [vmem:[%s1985_s4] sm:$0xff] %v1417_v1 }
  0x15 PF: > { %v263_v2 = vld [vmem:[%s1469_s26 + $0x10] sm:$0xff]  ;;  %v261_v3 = vld [vmem:[%s1469_s26] sm:$0xff]  ;;  %v264_v4 = vld [vmem:[%s1469_s26 + $0x18] sm:$0xff]  ;;  %v1418_v5 = vmov 0   ;;  %v1419_v35 = vmov 1   ;;  %v1420_v36 = vmov 2  }
  0x16   : > { %1389 = vset.pattern.permute.xlu1 %v1418_v5  ;;  %1388 = vset.pattern.permute.xlu0 %v1418_v5  ;;  %vm352_vm0 = vcmp.gt.f32.partialorder %v263_v2, 0.0  ;;  %vm350_vm1 = vcmp.gt.f32.partialorder %v261_v3, 0.0  ;;  %vm353_vm2 = vcmp.gt.f32.partialorder %v264_v4, 0.0  ;;  %v262_v6 = vld [vmem:[%s1469_s26 + $0x8] sm:$0xff]  ;;  %v265_v10 = vld [vmem:[%s1469_s26 + $0x20] sm:$0xff]  ;;  %v268_v13 = vld [vmem:[%s1469_s26 + $0x38] sm:$0xff] }
  0x17   : > { %v1486_v7 = vsel %vm352_vm0, 1, %v1418_v5  ;;  %v1488_v8 = vsel %vm350_vm1, 1, %v1418_v5  ;;  %vm351_vm3 = vcmp.gt.f32.partialorder %v262_v6, 0.0  ;;  %v266_v9 = vld [vmem:[%s1469_s26 + $0x28] sm:$0xff]  ;;  %v1494_v11 = vsel %vm353_vm2, 1, %v1418_v5  ;;  %v267_v14 = vld [vmem:[%s1469_s26 + $0x30] sm:$0xff] }
  0x18   : > { %389 = vperm.xlu1 %1389, %v1486_v7   ;;  %383 = vperm.xlu0 %1388, %v1488_v8   ;;  %1996 = vst [vmem:[#allocation2_spill] sm:$0xff] %v1494_v11  ;;  %v1496_v12 = vsel %vm351_vm3, 1, %v1418_v5  ;;  %vm355_vm4 = vcmp.gt.f32.partialorder %v266_v9, 0.0  ;;  %vm354_vm5 = vcmp.gt.f32.partialorder %v265_v10, 0.0  ;;  %vm357_vm6 = vcmp.gt.f32.partialorder %v268_v13, 0.0  ;;  %v270_v17 = vld [vmem:[%s1469_s26 + $0x48] sm:$0xff] }
  0x19   : > { %v1502_v15 = vsel %vm355_vm4, 1, %v1418_v5  ;;  %v1504_v16 = vsel %vm354_vm5, 1, %v1418_v5  ;;  %vm356_vm7 = vcmp.gt.f32.partialorder %v267_v14, 0.0  ;;  %v269_v18 = vld [vmem:[%s1469_s26 + $0x40] sm:$0xff]  ;;  %v1510_v19 = vsel %vm357_vm6, 1, %v1418_v5  ;;  %v272_v21 = vld [vmem:[%s1469_s26 + $0x58] sm:$0xff] }
  0x1a   : > { %1997 = vst [vmem:[#allocation3_spill] sm:$0xff] %v1502_v15  ;;  %1998 = vst [vmem:[#allocation4_spill] sm:$0xff] %v1510_v19  ;;  %v1512_v20 = vsel %vm356_vm7, 1, %v1418_v5  ;;  %vm359_vm8 = vcmp.gt.f32.partialorder %v270_v17, 0.0  ;;  %vm358_vm9 = vcmp.gt.f32.partialorder %v269_v18, 0.0  ;;  %v271_v22 = vld [vmem:[%s1469_s26 + $0x50] sm:$0xff] }
  0x1b   : > { %v1518_v23 = vsel %vm359_vm8, 1, %v1418_v5  ;;  %v1520_v24 = vsel %vm358_vm9, 1, %v1418_v5  ;;  %vm361_vm10 = vcmp.gt.f32.partialorder %v272_v21, 0.0  ;;  %vm360_vm11 = vcmp.gt.f32.partialorder %v271_v22, 0.0  ;;  %v274_v25 = vld [vmem:[%s1469_s26 + $0x68] sm:$0xff]  ;;  %v273_v26 = vld [vmem:[%s1469_s26 + $0x60] sm:$0xff] }
  0x1c   : > { %392 = vperm.xlu1 %1389, %v1494_v11   ;;  %386 = vperm.xlu0 %1388, %v1496_v12   ;;  %1999 = vst [vmem:[#allocation5_spill] sm:$0xff] %v1518_v23  ;;  %v1526_v27 = vsel %vm361_vm10, 1, %v1418_v5  ;;  %v1528_v28 = vsel %vm360_vm11, 1, %v1418_v5  ;;  %vm363_vm12 = vcmp.gt.f32.partialorder %v274_v25, 0.0  ;;  %vm362_vm13 = vcmp.gt.f32.partialorder %v273_v26, 0.0  ;;  %v276_v29 = vld [vmem:[%s1469_s26 + $0x78] sm:$0xff] }
  0x1d   : > { %v275_v30 = vld [vmem:[%s1469_s26 + $0x70] sm:$0xff]  ;;  %v1534_v31 = vsel %vm363_vm12, 1, %v1418_v5  ;;  %v1536_v32 = vsel %vm362_vm13, 1, %v1418_v5  ;;  %vm365_vm14 = vcmp.gt.f32.partialorder %v276_v29, 0.0  ;;  %v1315_v37 = vld [vmem:[%s1474_s30 + $0x38] sm:$0xff]   ;;  %v1421_v39 = vmov 0.0  }
  0x1e   : > { %2000 = vst [vmem:[#allocation6_spill] sm:$0xff] %v1534_v31  ;;  %vm364_vm15 = vcmp.gt.f32.partialorder %v275_v30, 0.0  ;;  %v1540_v33 = vsel %vm365_vm14, 1, %v1418_v5  ;;  %v1567_v38 = vunpack.c.h.bf16 %v1315_v37  ;;  %1333 = vmatprep.subr.mxu0 %v1421_v39  ;;  %v1314_v40 = vld [vmem:[%s1474_s30 + $0x30] sm:$0xff]   ;;  %v1573_v41 = vunpack.c.l.bf16 %v1315_v37  ;;  %v1313_v43 = vld [vmem:[%s1474_s30 + $0x28] sm:$0xff]   ;;  %v1312_v46 = vld [vmem:[%s1474_s30 + $0x20] sm:$0xff]  }
  0x1f   : > { %v1542_v34 = vsel %vm364_vm15, 1, %v1418_v5  ;;  %v1580_v42 = vunpack.c.h.bf16 %v1314_v40  ;;  %v1585_v44 = vunpack.c.l.bf16 %v1314_v40  ;;  %v1590_v45 = vunpack.c.h.bf16 %v1313_v43  ;;  %v1311_v49 = vld [vmem:[%s1474_s30 + $0x18] sm:$0xff]   ;;  %v1310_v53 = vld [vmem:[%s1474_s30 + $0x10] sm:$0xff]   ;;  %v1309_v57 = vld [vmem:[%s1474_s30 + $0x8] sm:$0xff]  }
  0x20   : > { %398 = vperm.xlu1 %1389, %v1502_v15   ;;  %395 = vperm.xlu0 %1388, %v1504_v16   ;;  %v1598_v47 = vunpack.c.l.bf16 %v1313_v43  ;;  %v1602_v48 = vunpack.c.h.bf16 %v1312_v46  ;;  %v1608_v50 = vunpack.c.l.bf16 %v1312_v46  ;;  %v1422_v51 = vmov 3   ;;  %v1278_v59 = vld [vmem:[%s1474_s30] sm:$0xff]  }
  0x21   : > { %1334 = vmatpush3.msra.mxu0 %v1567_v38  ;;  %v1614_v52 = vunpack.c.h.bf16 %v1311_v49  ;;  %v1619_v54 = vunpack.c.l.bf16 %v1311_v49  ;;  %v1624_v55 = vunpack.c.h.bf16 %v1310_v53  ;;  %v1629_v56 = vunpack.c.l.bf16 %v1310_v53  ;;  %v260_v63 = vld [vmem:[%s1464_s22] sm:$0xff] }
  0x22   : > { %1335 = vmatprep.subr.mxu0 %v1421_v39  ;;  %v1637_v58 = vunpack.c.h.bf16 %v1309_v57  ;;  %vm1423_vm0 = vmmov 0   ;;  %v1643_v60 = vunpack.c.l.bf16 %v1309_v57  ;;  %v1648_v61 = vunpack.c.h.bf16 %v1278_v59 }
  0x23   : > { %1336 = vmatpush3.msra.mxu0 %v1573_v41  ;;  %1365 = vmatprep.mubr.msk.f32.mxu0 %vm1423_vm0, %v1421_v39  ;;  %v1655_v62 = vunpack.c.l.bf16 %v1278_v59  ;;  %v1424_v3 = vmov 4   ;;  %v1425_v30 = vmov 5  }
  0x24   : > { %404 = vperm.xlu1 %1389, %v1510_v19   ;;  %401 = vperm.xlu0 %1388, %v1512_v20  }
  0x25   : > { %1337 = vmatprep.subr.mxu0 %v1421_v39 }
  0x26   : > { %1338 = vmatpush3.msra.mxu0 %v1580_v42 }
  0x27   : > { %1339 = vmatprep.subr.mxu0 %v1421_v39 }
  0x28   : > { %410 = vperm.xlu1 %1389, %v1518_v23   ;;  %407 = vperm.xlu0 %1388, %v1520_v24  }
  0x29   : > { %1340 = vmatpush3.msra.mxu0 %v1585_v44 }
  0x2a   : > { %1341 = vmatprep.subr.mxu0 %v1421_v39 }
  0x2b   : > { %1342 = vmatpush3.msra.mxu0 %v1590_v45 }
  0x2c   : > { %416 = vperm.xlu1 %1389, %v1526_v27   ;;  %413 = vperm.xlu0 %1388, %v1528_v28  }
  0x2d   : > { %1343 = vmatprep.subr.mxu0 %v1421_v39 }
  0x2e   : > { %1344 = vmatpush3.msra.mxu0 %v1598_v47 }
  0x2f   : > { %1345 = vmatprep.subr.mxu0 %v1421_v39 }
  0x30   : > { %422 = vperm.xlu1 %1389, %v1534_v31   ;;  %419 = vperm.xlu0 %1388, %v1536_v32  }
  0x31   : > { %1346 = vmatpush3.msra.mxu0 %v1602_v48 }
  0x32   : > { %1347 = vmatprep.subr.mxu0 %v1421_v39 }
  0x33   : > { %1348 = vmatpush3.msra.mxu0 %v1608_v50 }
  0x34   : > { %428 = vperm.xlu1 %1389, %v1540_v33   ;;  %425 = vperm.xlu0 %1388, %v1542_v34  }
  0x35   : > { %1349 = vmatprep.subr.mxu0 %v1421_v39 }
  0x36   : > { %1350 = vmatpush3.msra.mxu0 %v1614_v52 }
  0x37   : > { %1351 = vmatprep.subr.mxu0 %v1421_v39 }
  0x38   : > { %1391 = vset.pattern.permute.xlu1 %v1419_v35  ;;  %1390 = vset.pattern.permute.xlu0 %v1419_v35 }
  0x39   : > { %487 = vperm.xlu1 %1391, %v1496_v12   ;;  %484 = vperm.xlu0 %1390, %v1488_v8  }
  0x3a   : > { %1352 = vmatpush3.msra.mxu0 %v1619_v54 }
  0x3b   : > { %1353 = vmatprep.subr.mxu0 %v1421_v39 }
  0x3c   : > { %1354 = vmatpush3.msra.mxu0 %v1624_v55 }
  0x3d   : > { %490 = vperm.xlu1 %1391, %v1486_v7   ;;  %493 = vperm.xlu0 %1390, %v1494_v11  }
  0x3e   : > { %1355 = vmatprep.subr.mxu0 %v1421_v39 }
  0x3f   : > { %1356 = vmatpush3.msra.mxu0 %v1629_v56 }
  0x40   : > { %1357 = vmatprep.subr.mxu0 %v1421_v39 }
  0x41   : > { %496 = vperm.xlu1 %1391, %v1504_v16   ;;  %499 = vperm.xlu0 %1390, %v1502_v15  }
  0x42   : > { %1358 = vmatpush3.msra.mxu0 %v1637_v58 }
  0x43   : > { %1359 = vmatprep.subr.mxu0 %v1421_v39 }
  0x44   : > { %1360 = vmatpush3.msra.mxu0 %v1643_v60 }
  0x45   : > { %502 = vperm.xlu1 %1391, %v1512_v20   ;;  %505 = vperm.xlu0 %1390, %v1510_v19  }
  0x46   : > { %1361 = vmatprep.subr.mxu0 %v1421_v39 }
  0x47   : > { %1362 = vmatpush3.msra.mxu0 %v1648_v61 }
  0x48   : > { %1363 = vmatprep.subr.mxu0 %v1421_v39 }
  0x49   : > { %508 = vperm.xlu1 %1391, %v1520_v24   ;;  %511 = vperm.xlu0 %1390, %v1518_v23  }
  0x4a   : > { %1364 = vmatpush3.msra.mxu0 %v1655_v62 }
  0x4b   : > { %1366 = vmatmul.mubr.f32.vlgmr.msra.gmra.mxu0 %v260_v63 }
  0x4d   : > { %514 = vperm.xlu1 %1391, %v1528_v28   ;;  %517 = vperm.xlu0 %1390, %v1526_v27  }
  0x51   : > { %520 = vperm.xlu1 %1391, %v1536_v32   ;;  %523 = vperm.xlu0 %1390, %v1534_v31  }
  0x55   : > { %526 = vperm.xlu1 %1391, %v1542_v34   ;;  %529 = vperm.xlu0 %1390, %v1540_v33  }
  0x59   : > { %1392 = vset.pattern.permute.xlu1 %v1420_v36  ;;  %1393 = vset.pattern.permute.xlu0 %v1420_v36 }
  0x5a   : > { %585 = vperm.xlu1 %1392, %v1488_v8   ;;  %588 = vperm.xlu0 %1393, %v1496_v12  }
  0x5e   : > { %591 = vperm.xlu1 %1392, %v1486_v7   ;;  %597 = vperm.xlu0 %1393, %v1504_v16  }
  0x62   : > { %594 = vperm.xlu1 %1392, %v1494_v11   ;;  %603 = vperm.xlu0 %1393, %v1512_v20  }
  0x66   : > { %600 = vperm.xlu1 %1392, %v1502_v15   ;;  %609 = vperm.xlu0 %1393, %v1520_v24  }
  0x6a   : > { %606 = vperm.xlu1 %1392, %v1510_v19   ;;  %615 = vperm.xlu0 %1393, %v1528_v28  }
  0x6e   : > { %612 = vperm.xlu1 %1392, %v1518_v23   ;;  %621 = vperm.xlu0 %1393, %v1536_v32  }
  0x72   : > { %618 = vperm.xlu1 %1392, %v1526_v27   ;;  %627 = vperm.xlu0 %1393, %v1542_v34  }
  0x76   : > { %624 = vperm.xlu1 %1392, %v1534_v31   ;;  %1394 = vset.pattern.permute.xlu0 %v1422_v51 }
  0x77   : > { %686 = vperm.xlu0 %1394, %v1488_v8  }
  0x7a   : > { %630 = vperm.xlu1 %1392, %v1540_v33  }
  0x7b   : > { %695 = vperm.xlu0 %1394, %v1494_v11  }
  0x7e   : > { %1395 = vset.pattern.permute.xlu1 %v1422_v51 }
  0x7f   : > { %689 = vperm.xlu1 %1395, %v1496_v12   ;;  %701 = vperm.xlu0 %1394, %v1502_v15  }
  0x83   : > { %692 = vperm.xlu1 %1395, %v1486_v7   ;;  %707 = vperm.xlu0 %1394, %v1510_v19  }
  0x87   : > { %698 = vperm.xlu1 %1395, %v1504_v16   ;;  %713 = vperm.xlu0 %1394, %v1518_v23  }
  0x8b   : > { %704 = vperm.xlu1 %1395, %v1512_v20   ;;  %719 = vperm.xlu0 %1394, %v1526_v27  }
  0x8f   : > { %710 = vperm.xlu1 %1395, %v1520_v24   ;;  %725 = vperm.xlu0 %1394, %v1534_v31  }
  0x93   : > { %v1664_v0 = vpop.permute.xlu1 %389  ;;  %716 = vperm.xlu1 %1395, %v1528_v28   ;;  %731 = vperm.xlu0 %1394, %v1540_v33   ;;  %v1668_v1 = vpop.permute.xlu0 %383 }
  0x97   : > { %v1670_v2 = vpop.permute.xlu1 %392  ;;  %722 = vperm.xlu1 %1395, %v1536_v32   ;;  %1397 = vset.pattern.permute.xlu0 %v1424_v3  ;;  %v1673_v4 = vpop.permute.xlu0 %386 }
  0x98   : > { %790 = vperm.xlu0 %1397, %v1496_v12  }
  0x9b   : > { %v1676_v5 = vpop.permute.xlu1 %398  ;;  %728 = vperm.xlu1 %1395, %v1542_v34   ;;  %v1679_v6 = vpop.permute.xlu0 %395 }
  0x9c   : > { %799 = vperm.xlu0 %1397, %v1504_v16  }
  0x9f   : > { %v1682_v9 = vpop.permute.xlu1 %404  ;;  %1396 = vset.pattern.permute.xlu1 %v1424_v3  ;;  %v1684_v10 = vpop.permute.xlu0 %401 }
  0xa0   : > { %787 = vperm.xlu1 %1396, %v1488_v8   ;;  %805 = vperm.xlu0 %1397, %v1512_v20  }
  0xa3   : > { %v1688_v13 = vpop.permute.xlu1 %410  ;;  %v1690_v14 = vpop.permute.xlu0 %407 }
  0xa4   : > { %793 = vperm.xlu1 %1396, %v1486_v7   ;;  %811 = vperm.xlu0 %1397, %v1520_v24  }
  0xa7   : > { %v1694_v17 = vpop.permute.xlu1 %416  ;;  %v1696_v18 = vpop.permute.xlu0 %413 }
  0xa8   : > { %796 = vperm.xlu1 %1396, %v1494_v11   ;;  %817 = vperm.xlu0 %1397, %v1528_v28  }
  0xab   : > { %v1700_v21 = vpop.permute.xlu1 %422  ;;  %v1702_v22 = vpop.permute.xlu0 %419 }
  0xac   : > { %802 = vperm.xlu1 %1396, %v1502_v15   ;;  %823 = vperm.xlu0 %1397, %v1536_v32  }
  0xaf   : > { %v1706_v25 = vpop.permute.xlu1 %428  ;;  %v1708_v26 = vpop.permute.xlu0 %425 }
  0xb0   : > { %808 = vperm.xlu1 %1396, %v1510_v19   ;;  %829 = vperm.xlu0 %1397, %v1542_v34  }
  0xb4   : > { %v488_v29 = vpop.permute.xlu1 %487  ;;  %814 = vperm.xlu1 %1396, %v1518_v23   ;;  %1398 = vset.pattern.permute.xlu0 %v1425_v30  ;;  %v485_v35 = vpop.permute.xlu0 %484 }
  0xb5   : > { %888 = vperm.xlu0 %1398, %v1488_v8   ;;  %vm532_vm2 = vcmp.eq.s32.totalorder %v488_v29, 1  ;;  %vm531_vm6 = vcmp.eq.s32.totalorder %v485_v35, 1 }
  0xb6   : > { %v548_v51 = vsel %vm532_vm2, %v1648_v61, -3.4028235e+38  ;;  %vm430_vm2 = vcmp.eq.s32.totalorder %v1668_v1, 1 }
  0xb7   : > { %v446_v1 = vsel %vm430_vm2, %v1655_v62, -3.4028235e+38  ;;  %vm444_vm2 = vcmp.eq.s32.totalorder %v1708_v26, 1 }
  0xb8   : > { %v491_v36 = vpop.permute.xlu1 %490  ;;  %820 = vperm.xlu1 %1396, %v1526_v27   ;;  %v494_v37 = vpop.permute.xlu0 %493 }
  0xb9   : > { %897 = vperm.xlu0 %1398, %v1494_v11   ;;  %vm534_vm3 = vcmp.eq.s32.totalorder %v494_v37, 1  ;;  %vm533_vm11 = vcmp.eq.s32.totalorder %v491_v36, 1 }
  0xba   : > { %v550_v53 = vsel %vm534_vm3, %v1637_v58, -3.4028235e+38  ;;  %vm431_vm3 = vcmp.eq.s32.totalorder %v1673_v4, 1 }
  0xbc   : > { %v497_v39 = vpop.permute.xlu1 %496  ;;  %826 = vperm.xlu1 %1396, %v1534_v31   ;;  %v500_v40 = vpop.permute.xlu0 %499 }
  0xbd   : > { %903 = vperm.xlu0 %1398, %v1502_v15   ;;  %vm536_vm1 = vcmp.eq.s32.totalorder %v500_v40, 1  ;;  %vm535_vm7 = vcmp.eq.s32.totalorder %v497_v39, 1  ;;  %v547_v15 = vsel %vm531_vm6, %v1655_v62, -3.4028235e+38  ;;  %vm437_vm6 = vcmp.eq.s32.totalorder %v1682_v9, 1 }
  0xbe   : > { %v552_v49 = vsel %vm536_vm1, %v1624_v55, -3.4028235e+38  ;;  %vm432_vm1 = vcmp.eq.s32.totalorder %v1664_v0, 1 }
  0xbf   : > { %v564_v3 = vmax.f32 %v548_v51, %v552_v49  ;;  %v448_v0 = vsel %vm432_vm1, %v1643_v60, -3.4028235e+38  ;;  %vm443_vm1 = vcmp.eq.s32.totalorder %v1700_v21, 1 }
  0xc0   : > { %v503_v43 = vpop.permute.xlu1 %502  ;;  %832 = vperm.xlu1 %1396, %v1540_v33   ;;  %v506_v46 = vpop.permute.xlu0 %505 }
  0xc1   : > { %vm538_vm4 = vcmp.eq.s32.totalorder %v506_v46, 1  ;;  %909 = vperm.xlu0 %1398, %v1510_v19   ;;  %vm537_vm8 = vcmp.eq.s32.totalorder %v503_v43, 1  ;;  %v549_v43 = vsel %vm533_vm11, %v1643_v60, -3.4028235e+38 }
  0xc2   : > { %v554_v57 = vsel %vm538_vm4, %v1614_v52, -3.4028235e+38  ;;  %v553_v49 = vsel %vm537_vm8, %v1619_v54, -3.4028235e+38  ;;  %vm435_vm4 = vcmp.eq.s32.totalorder %v1676_v5, 1  ;;  %vm433_vm8 = vcmp.eq.s32.totalorder %v1670_v2, 1 }
  0xc3   : > { %v566_v37 = vmax.f32 %v550_v53, %v554_v57  ;;  %v451_v4 = vsel %vm435_vm4, %v1624_v55, -3.4028235e+38 }
  0xc4   : > { %v509_v59 = vpop.permute.xlu1 %508  ;;  %1399 = vset.pattern.permute.xlu1 %v1425_v30  ;;  %v512_v63 = vpop.permute.xlu0 %511  ;;  %v551_v30 = vsel %vm535_vm7, %v1629_v56, -3.4028235e+38  ;;  %vm436_vm7 = vcmp.eq.s32.totalorder %v1684_v10, 1  ;;  %v449_v10 = vsel %vm433_vm8, %v1637_v58, -3.4028235e+38 }
  0xc5   : > { %vm540_vm5 = vcmp.eq.s32.totalorder %v512_v63, 1  ;;  %891 = vperm.xlu1 %1399, %v1496_v12   ;;  %915 = vperm.xlu0 %1398, %v1518_v23   ;;  %vm539_vm9 = vcmp.eq.s32.totalorder %v509_v59, 1  ;;  %v452_v9 = vsel %vm436_vm7, %v1619_v54, -3.4028235e+38 }
  0xc6   : > { %v556_v29 = vsel %vm540_vm5, %v1602_v48, -3.4028235e+38  ;;  %v555_v51 = vsel %vm539_vm9, %v1608_v50, -3.4028235e+38  ;;  %vm434_vm5 = vcmp.eq.s32.totalorder %v1679_v6, 1  ;;  %vm439_vm9 = vcmp.eq.s32.totalorder %v1688_v13, 1 }
  0xc7   : > { %v568_v40 = vmax.f32 %v564_v3, %v556_v29  ;;  %v565_v3 = vmax.f32 %v549_v43, %v553_v49  ;;  %v1426_v43 = vmov 6   ;;  %v450_v5 = vsel %vm434_vm5, %v1629_v56, -3.4028235e+38 }
  0xc8   : > { %v515_v46 = vpop.permute.xlu1 %514  ;;  %v518_v19 = vpop.permute.xlu0 %517  ;;  %v453_v6 = vsel %vm437_vm6, %v1614_v52, -3.4028235e+38  ;;  %v455_v2 = vsel %vm439_vm9, %v1602_v48, -3.4028235e+38 }
  0xc9   : > { %vm542_vm10 = vcmp.eq.s32.totalorder %v518_v19, 1  ;;  %894 = vperm.xlu1 %1399, %v1486_v7   ;;  %921 = vperm.xlu0 %1398, %v1526_v27   ;;  %vm541_vm12 = vcmp.eq.s32.totalorder %v515_v46, 1  ;;  %v563_v19 = vmax.f32 %v547_v15, %v551_v30 }
  0xca   : > { %v558_v35 = vsel %vm542_vm10, %v1590_v45, -3.4028235e+38  ;;  %v557_v36 = vsel %vm541_vm12, %v1598_v47, -3.4028235e+38  ;;  %vm438_vm10 = vcmp.eq.s32.totalorder %v1690_v14, 1  ;;  %vm441_vm12 = vcmp.eq.s32.totalorder %v1694_v17, 1 }
  0xcb   : > { %v570_v39 = vmax.f32 %v566_v37, %v558_v35  ;;  %v567_v29 = vmax.f32 %v563_v19, %v555_v51  ;;  %v569_v23 = vmax.f32 %v565_v3, %v557_v36  ;;  %v465_v14 = vmax.f32 %v449_v10, %v453_v6 }
  0xcc   : > { %v521_v53 = vpop.permute.xlu1 %520  ;;  %v524_v57 = vpop.permute.xlu0 %523  ;;  %v454_v3 = vsel %vm438_vm10, %v1608_v50, -3.4028235e+38  ;;  %v457_v17 = vsel %vm441_vm12, %v1590_v45, -3.4028235e+38 }
  0xcd   : > { %vm543_vm13 = vcmp.eq.s32.totalorder %v521_v53, 1  ;;  %vm544_vm14 = vcmp.eq.s32.totalorder %v524_v57, 1  ;;  %900 = vperm.xlu1 %1399, %v1504_v16   ;;  %927 = vperm.xlu0 %1398, %v1534_v31  }
  0xce   : > { %v559_v59 = vsel %vm543_vm13, %v1585_v44, -3.4028235e+38  ;;  %v560_v63 = vsel %vm544_vm14, %v1580_v42, -3.4028235e+38  ;;  %vm440_vm13 = vcmp.eq.s32.totalorder %v1696_v18, 1 }
  0xcf   : > { %v572_v37 = vmax.f32 %v568_v40, %v560_v63  ;;  %v571_v11 = vmax.f32 %v567_v29, %v559_v59  ;;  %v462_v59 = vmax.f32 %v446_v1, %v450_v5  ;;  %v464_v63 = vmax.f32 %v448_v0, %v452_v9 }
  0xd0   : > { %v527_v46 = vpop.permute.xlu1 %526  ;;  %v530_v35 = vpop.permute.xlu0 %529  ;;  %v459_v0 = vsel %vm443_vm1, %v1580_v42, -3.4028235e+38 }
  0xd1   : > { %vm545_vm15 = vcmp.eq.s32.totalorder %v527_v46, 1  ;;  %vm546_vm0 = vcmp.eq.s32.totalorder %v530_v35, 1  ;;  %906 = vperm.xlu1 %1399, %v1512_v20   ;;  %933 = vperm.xlu0 %1398, %v1540_v33   ;;  %v575_v31 = vmax.f32 %v571_v11, %v572_v37  ;;  %v456_v46 = vsel %vm440_vm13, %v1598_v47, -3.4028235e+38 }
  0xd2   : > { %v561_v15 = vsel %vm545_vm15, %v1573_v41, -3.4028235e+38  ;;  %v562_v30 = vsel %vm546_vm0, %v1567_v38, -3.4028235e+38  ;;  %vm445_vm15 = vcmp.eq.s32.totalorder %v1706_v25, 1  ;;  %v469_v25 = vmax.f32 %v465_v14, %v457_v17 }
  0xd3   : > { %v573_v53 = vmax.f32 %v569_v23, %v561_v15  ;;  %v574_v57 = vmax.f32 %v570_v39, %v562_v30 }
  0xd5   : > { %v576_v49 = vmax.f32 %v573_v53, %v574_v57  ;;  %912 = vperm.xlu1 %1399, %v1520_v24   ;;  %v586_v40 = vpop.permute.xlu1 %585  ;;  %v1745_v51 = vpop.permute.xlu0 %588  ;;  %1401 = vset.pattern.permute.xlu0 %v1426_v43  ;;  %v461_v53 = vsel %vm445_vm15, %v1567_v38, -3.4028235e+38 }
  0xd6   : > { %992 = vperm.xlu0 %1401, %v1496_v12   ;;  %vm632_vm14 = vcmp.eq.s32.totalorder %v586_v40, 1  ;;  %vm633_vm6 = vcmp.eq.s32.totalorder %v1745_v51, 1  ;;  %v473_v6 = vmax.f32 %v469_v25, %v461_v53  ;;  %v2001_v51 = vld [vmem:[#allocation6_spill] sm:$0xff] }
  0xd7   : > { %v1751_v19 = vmax.f32 %v575_v31, %v576_v49  ;;  %v447_v31 = vsel %vm431_vm3, %v1648_v61, -3.4028235e+38  ;;  %v648_v18 = vsel %vm632_vm14, %v1655_v62, -3.4028235e+38  ;;  %vm442_vm3 = vcmp.eq.s32.totalorder %v1702_v22, 1 }
  0xd8   : > { %v463_v36 = vmax.f32 %v447_v31, %v451_v4  ;;  %v460_v49 = vsel %vm444_vm2, %v1573_v41, -3.4028235e+38  ;;  %v458_v5 = vsel %vm442_vm3, %v1585_v44, -3.4028235e+38  ;;  %v649_v21 = vsel %vm633_vm6, %v1648_v61, -3.4028235e+38 }
  0xd9   : > { %918 = vperm.xlu1 %1399, %v1528_v28   ;;  %v592_v11 = vpop.permute.xlu1 %591  ;;  %v598_v23 = vpop.permute.xlu0 %597 }
  0xda   : > { %1001 = vperm.xlu0 %1401, %v1504_v16   ;;  %vm636_vm11 = vcmp.eq.s32.totalorder %v598_v23, 1  ;;  %v467_v37 = vmax.f32 %v463_v36, %v455_v2  ;;  %vm634_vm4 = vcmp.eq.s32.totalorder %v592_v11, 1  ;;  %v466_v23 = vmax.f32 %v462_v59, %v454_v3 }
  0xdb   : > { %v652_v29 = vsel %vm636_vm11, %v1629_v56, -3.4028235e+38  ;;  %v468_v11 = vmax.f32 %v464_v63, %v456_v46  ;;  %v650_v1 = vsel %vm634_vm4, %v1643_v60, -3.4028235e+38 }
  0xdc   : > { %v664_v30 = vmax.f32 %v648_v18, %v652_v29  ;;  %v471_v36 = vmax.f32 %v467_v37, %v459_v0  ;;  %v470_v59 = vmax.f32 %v466_v23, %v458_v5 }
  0xdd   : > { %924 = vperm.xlu1 %1399, %v1536_v32   ;;  %v1774_v13 = vpop.permute.xlu1 %594  ;;  %v604_v39 = vpop.permute.xlu0 %603  ;;  %v472_v10 = vmax.f32 %v468_v11, %v460_v49 }
  0xde   : > { %1007 = vperm.xlu0 %1401, %v1512_v20   ;;  %vm638_vm0 = vcmp.eq.s32.totalorder %v604_v39, 1  ;;  %vm635_vm10 = vcmp.eq.s32.totalorder %v1774_v13, 1 }
  0xdf   : > { %v654_v57 = vsel %vm638_vm0, %v1619_v54, -3.4028235e+38  ;;  %v475_v29 = vmax.f32 %v472_v10, %v473_v6  ;;  %v651_v13 = vsel %vm635_vm10, %v1637_v58, -3.4028235e+38  ;;  %vm1192_vm10 = vcmask 1041408  }
  0xe0   : > { %v666_v9 = vmax.f32 %v650_v1, %v654_v57  ;;  %v2002_v57 = vld [vmem:[#allocation2_spill] sm:$0xff]  ;;  %v578_v1 = vrot.slane %v1751_v19, 4 }
  0xe1   : > { %930 = vperm.xlu1 %1399, %v1542_v34   ;;  %v601_v35 = vpop.permute.xlu1 %600  ;;  %v610_v15 = vpop.permute.xlu0 %609 }
  0xe2   : > { %vm640_vm5 = vcmp.eq.s32.totalorder %v610_v15, 1  ;;  %1013 = vperm.xlu0 %1401, %v1520_v24   ;;  %vm637_vm7 = vcmp.eq.s32.totalorder %v601_v35, 1  ;;  %v474_v15 = vmax.f32 %v470_v59, %v471_v36 }
  0xe3   : > { %v656_v26 = vsel %vm640_vm5, %v1608_v50, -3.4028235e+38  ;;  %v653_v2 = vsel %vm637_vm7, %v1624_v55, -3.4028235e+38 }
  0xe4   : > { %v1794_v40 = vmax.f32 %v664_v30, %v656_v26  ;;  %v665_v3 = vmax.f32 %v649_v21, %v653_v2  ;;  %v1427_v26 = vmov 7   ;;  %v476_v49 = vmax.f32 %v474_v15, %v475_v29  ;;  %v2005_v29 = vld [vmem:[#allocation5_spill] sm:$0xff] }
  0xe5   : > { %1400 = vset.pattern.permute.xlu1 %v1426_v43  ;;  %v607_v31 = vpop.permute.xlu1 %606  ;;  %v616_v4 = vpop.permute.xlu0 %615  ;;  %v579_v21 = vmax.f32 %v1751_v19, %v578_v1 }
  0xe6   : > { %vm642_vm8 = vcmp.eq.s32.totalorder %v616_v4, 1  ;;  %989 = vperm.xlu1 %1400, %v1488_v8   ;;  %1022 = vperm.xlu0 %1401, %v1526_v27   ;;  %vm639_vm9 = vcmp.eq.s32.totalorder %v607_v31, 1  ;;  %v2003_v4 = vld [vmem:[#allocation3_spill] sm:$0xff]  ;;  %v477_v6 = vrot.slane %v476_v49, 4 }
  0xe7   : > { %v658_v39 = vsel %vm642_vm8, %v1598_v47, -3.4028235e+38  ;;  %v655_v17 = vsel %vm639_vm9, %v1614_v52, -3.4028235e+38  ;;  %vm1190_vm9 = vcmask 1040384  }
  0xe8   : > { %v670_v22 = vmax.f32 %v666_v9, %v658_v39  ;;  %v667_v53 = vmax.f32 %v651_v13, %v655_v17  ;;  %v478_v36 = vmax.f32 %v476_v49, %v477_v6 }
  0xe9   : > { %v613_v14 = vpop.permute.xlu1 %612  ;;  %v622_v63 = vpop.permute.xlu0 %621 }
  0xea   : > { %vm641_vm11 = vcmp.eq.s32.totalorder %v613_v14, 1  ;;  %vm644_vm12 = vcmp.eq.s32.totalorder %v622_v63, 1  ;;  %995 = vperm.xlu1 %1400, %v1486_v7   ;;  %1028 = vperm.xlu0 %1401, %v2001_v51   ;;  %v580_v63 = vrot.slane %v579_v21, 2 }
  0xeb   : > { %v657_v46 = vsel %vm641_vm11, %v1602_v48, -3.4028235e+38  ;;  %v660_v18 = vsel %vm644_vm12, %v1585_v44, -3.4028235e+38 }
  0xec   : > { %v669_v37 = vmax.f32 %v665_v3, %v657_v46  ;;  %v672_v35 = vmax.f32 %v1794_v40, %v660_v18  ;;  %v479_v18 = vrot.slane %v478_v36, 2  ;;  %v581_v15 = vmax.f32 %v579_v21, %v580_v63 }
  0xed   : > { %v619_v30 = vpop.permute.xlu1 %618  ;;  %v628_v25 = vpop.permute.xlu0 %627 }
  0xee   : > { %vm643_vm13 = vcmp.eq.s32.totalorder %v619_v30, 1  ;;  %vm646_vm14 = vcmp.eq.s32.totalorder %v628_v25, 1  ;;  %998 = vperm.xlu1 %1400, %v2002_v57   ;;  %1406 = vset.pattern.permute.xlu0 %v1427_v26  ;;  %v480_v49 = vmax.f32 %v478_v36, %v479_v18 }
  0xef   : > { %v659_v23 = vsel %vm643_vm13, %v1590_v45, -3.4028235e+38  ;;  %v662_v11 = vsel %vm646_vm14, %v1573_v41, -3.4028235e+38  ;;  %1090 = vperm.xlu0 %1406, %v1488_v8   ;;  %v2004_v8 = vld [vmem:[#allocation4_spill] sm:$0xff] }
  0xf0   : > { %v671_v40 = vmax.f32 %v667_v53, %v659_v23  ;;  %v674_v0 = vmax.f32 %v670_v22, %v662_v11 }
  0xf1   : > { %v625_v31 = vpop.permute.xlu1 %624 }
  0xf2   : > { %vm645_vm15 = vcmp.eq.s32.totalorder %v625_v31, 1  ;;  %1004 = vperm.xlu1 %1400, %v2003_v4   ;;  %v687_v5 = vpop.permute.xlu0 %686 }
  0xf3   : > { %v661_v9 = vsel %vm645_vm15, %v1580_v42, -3.4028235e+38  ;;  %1099 = vperm.xlu0 %1406, %v2002_v57   ;;  %vm733_vm4 = vcmp.eq.s32.totalorder %v687_v5, 1 }
  0xf4   : > { %v673_v10 = vmax.f32 %v669_v37, %v661_v9  ;;  %v749_v1 = vsel %vm733_vm4, %v1655_v62, -3.4028235e+38  ;;  %v481_v9 = vrot.slane %v480_v49, 1 }
  0xf5   : > { %v631_v2 = vpop.permute.xlu1 %630 }
  0xf6   : > { %v676_v39 = vmax.f32 %v672_v35, %v673_v10  ;;  %vm647_vm0 = vcmp.eq.s32.totalorder %v631_v2, 1  ;;  %1010 = vperm.xlu1 %1400, %v2004_v8   ;;  %v696_v22 = vpop.permute.xlu0 %695 }
  0xf7   : > { %v663_v59 = vsel %vm647_vm0, %v1567_v38, -3.4028235e+38  ;;  %1105 = vperm.xlu0 %1406, %v2003_v4   ;;  %vm736_vm1 = vcmp.eq.s32.totalorder %v696_v22, 1 }
  0xf8   : > { %v675_v14 = vmax.f32 %v671_v40, %v663_v59  ;;  %v752_v25 = vsel %vm736_vm1, %v1637_v58, -3.4028235e+38  ;;  %v582_v40 = vrot.slane %v581_v15, 1  ;;  %v482_v59 = vmax.f32 %v480_v49, %v481_v9 }
  0xfa   : > { %v677_v3 = vmax.f32 %v674_v0, %v675_v14  ;;  %1016 = vperm.xlu1 %1400, %v2005_v29   ;;  %v690_v17 = vpop.permute.xlu1 %689  ;;  %v702_v46 = vpop.permute.xlu0 %701  ;;  %v583_v21 = vmax.f32 %v581_v15, %v582_v40 }
  0xfb   : > { %vm734_vm2 = vcmp.eq.s32.totalorder %v690_v17, 1  ;;  %vm738_vm3 = vcmp.eq.s32.totalorder %v702_v46, 1  ;;  %1111 = vperm.xlu0 %1406, %v2004_v8  }
  0xfc   : > { %v678_v19 = vmax.f32 %v676_v39, %v677_v3  ;;  %v750_v37 = vsel %vm734_vm2, %v1648_v61, -3.4028235e+38  ;;  %v754_v35 = vsel %vm738_vm3, %v1624_v55, -3.4028235e+38  ;;  %v1191_v17 = vsel %vm1190_vm9, %v482_v59, %v583_v21 }
  0xfd   : > { %v766_v13 = vmax.f32 %v750_v37, %v754_v35 }
  0xfe   : > { %v679_v30 = vrot.slane %v678_v19, 4  ;;  %1402 = vset.pattern.permute.xlu1 %v1427_v26  ;;  %v693_v53 = vpop.permute.xlu1 %692  ;;  %v708_v57 = vpop.permute.xlu0 %707 }
  0xff   : > { %vm740_vm5 = vcmp.eq.s32.totalorder %v708_v57, 1  ;;  %1093 = vperm.xlu1 %1402, %v1496_v12   ;;  %1120 = vperm.xlu0 %1406, %v1528_v28   ;;  %vm735_vm8 = vcmp.eq.s32.totalorder %v693_v53, 1 }
 0x100   : > { %v680_v23 = vmax.f32 %v678_v19, %v679_v30  ;;  %v756_v11 = vsel %vm740_vm5, %v1614_v52, -3.4028235e+38  ;;  %v751_v14 = vsel %vm735_vm8, %v1643_v60, -3.4028235e+38 }
 0x101   : > { %v768_v0 = vmax.f32 %v752_v25, %v756_v11 }
 0x102   : > { %v681_v31 = vrot.slane %v680_v23, 2  ;;  %v699_v4 = vpop.permute.xlu1 %698  ;;  %v714_v6 = vpop.permute.xlu0 %713 }
 0x103   : > { %vm737_vm6 = vcmp.eq.s32.totalorder %v699_v4, 1  ;;  %vm742_vm7 = vcmp.eq.s32.totalorder %v714_v6, 1  ;;  %1096 = vperm.xlu1 %1402, %v1486_v7   ;;  %1126 = vperm.xlu0 %1406, %v1536_v32  }
 0x104   : > { %v682_v12 = vmax.f32 %v680_v23, %v681_v31  ;;  %v753_v5 = vsel %vm737_vm6, %v1629_v56, -3.4028235e+38  ;;  %v758_v10 = vsel %vm742_vm7, %v1602_v48, -3.4028235e+38 }
 0x105   : > { %v765_v2 = vmax.f32 %v749_v1, %v753_v5  ;;  %v770_v39 = vmax.f32 %v766_v13, %v758_v10 }
 0x106   : > { %v683_v8 = vrot.slane %v682_v12, 1  ;;  %v705_v22 = vpop.permute.xlu1 %704  ;;  %v720_v36 = vpop.permute.xlu0 %719 }
 0x107   : > { %vm739_vm11 = vcmp.eq.s32.totalorder %v705_v22, 1  ;;  %vm744_vm12 = vcmp.eq.s32.totalorder %v720_v36, 1  ;;  %1102 = vperm.xlu1 %1402, %v1504_v16   ;;  %1135 = vperm.xlu0 %1406, %v1540_v33  }
 0x108   : > { %v684_v7 = vmax.f32 %v682_v12, %v683_v8  ;;  %v755_v63 = vsel %vm739_vm11, %v1619_v54, -3.4028235e+38  ;;  %v760_v3 = vsel %vm744_vm12, %v1590_v45, -3.4028235e+38 }
 0x109   : > { %v767_v46 = vmax.f32 %v751_v14, %v755_v63  ;;  %v772_v18 = vmax.f32 %v768_v0, %v760_v3 }
 0x10a   : > { %v1852_v19 = vsel %vm1192_vm10, %v1191_v17, %v684_v7  ;;  %v711_v37 = vpop.permute.xlu1 %710  ;;  %v726_v35 = vpop.permute.xlu0 %725  ;;  %vm1194_vm10 = vcmask 1042432  }
 0x10b   : > { %vm741_vm13 = vcmp.eq.s32.totalorder %v711_v37, 1  ;;  %vm746_vm14 = vcmp.eq.s32.totalorder %v726_v35, 1  ;;  %1108 = vperm.xlu1 %1402, %v1512_v20  }
 0x10c   : > { %v757_v16 = vsel %vm741_vm13, %v1608_v50, -3.4028235e+38  ;;  %v762_v15 = vsel %vm746_vm14, %v1580_v42, -3.4028235e+38 }
 0x10d   : > { %v769_v13 = vmax.f32 %v765_v2, %v757_v16  ;;  %v774_v30 = vmax.f32 %v770_v39, %v762_v15 }
 0x10e   : > { %v717_v25 = vpop.permute.xlu1 %716  ;;  %v732_v53 = vpop.permute.xlu0 %731 }
 0x10f   : > { %vm743_vm15 = vcmp.eq.s32.totalorder %v717_v25, 1  ;;  %1403 = vset.pattern.permute.xlu1 %v1426_v43  ;;  %vm748_vm0 = vcmp.eq.s32.totalorder %v732_v53, 1 }
 0x110   : > { %v759_v57 = vsel %vm743_vm15, %v1598_v47, -3.4028235e+38  ;;  %v764_v49 = vsel %vm748_vm0, %v1567_v38, -3.4028235e+38  ;;  %1019 = vperm.xlu1 %1403, %v1528_v28  }
 0x111   : > { %v771_v23 = vmax.f32 %v767_v46, %v759_v57  ;;  %v776_v20 = vmax.f32 %v772_v18, %v764_v49 }
 0x112   : > { %v723_v11 = vpop.permute.xlu1 %722 }
 0x113   : > { %vm745_vm1 = vcmp.eq.s32.totalorder %v723_v11, 1  ;;  %v791_v40 = vpop.permute.xlu0 %790 }
 0x114   : > { %v761_v0 = vsel %vm745_vm1, %v1585_v44, -3.4028235e+38  ;;  %1404 = vset.pattern.permute.xlu1 %v1427_v26  ;;  %vm835_vm8 = vcmp.eq.s32.totalorder %v791_v40, 1 }
 0x115   : > { %v773_v1 = vmax.f32 %v769_v13, %v761_v0  ;;  %1114 = vperm.xlu1 %1404, %v1520_v24   ;;  %v851_v16 = vsel %vm835_vm8, %v1648_v61, -3.4028235e+38 }
 0x116   : > { %v729_v31 = vpop.permute.xlu1 %728 }
 0x117   : > { %v777_v4 = vmax.f32 %v773_v1, %v774_v30  ;;  %vm747_vm2 = vcmp.eq.s32.totalorder %v729_v31, 1  ;;  %v800_v6 = vpop.permute.xlu0 %799 }
 0x118   : > { %v763_v9 = vsel %vm747_vm2, %v1573_v41, -3.4028235e+38  ;;  %vm838_vm3 = vcmp.eq.s32.totalorder %v800_v6, 1 }
 0x119   : > { %v775_v28 = vmax.f32 %v771_v23, %v763_v9  ;;  %1117 = vperm.xlu1 %1404, %v2005_v29   ;;  %v854_v5 = vsel %vm838_vm3, %v1629_v56, -3.4028235e+38 }
 0x11b   : > { %v778_v12 = vmax.f32 %v775_v28, %v776_v20  ;;  %v788_v10 = vpop.permute.xlu1 %787  ;;  %v806_v21 = vpop.permute.xlu0 %805 }
 0x11c   : > { %vm834_vm4 = vcmp.eq.s32.totalorder %v788_v10, 1  ;;  %vm840_vm5 = vcmp.eq.s32.totalorder %v806_v21, 1 }
 0x11d   : > { %v779_v2 = vmax.f32 %v777_v4, %v778_v12  ;;  %v850_v24 = vsel %vm834_vm4, %v1655_v62, -3.4028235e+38  ;;  %1123 = vperm.xlu1 %1404, %v1526_v27   ;;  %v856_v22 = vsel %vm840_vm5, %v1619_v54, -3.4028235e+38 }
 0x11e   : > { %v866_v39 = vmax.f32 %v850_v24, %v854_v5 }
 0x11f   : > { %v780_v8 = vrot.slane %v779_v2, 4  ;;  %v794_v36 = vpop.permute.xlu1 %793  ;;  %v812_v59 = vpop.permute.xlu0 %811 }
 0x120   : > { %vm836_vm6 = vcmp.eq.s32.totalorder %v794_v36, 1  ;;  %vm842_vm7 = vcmp.eq.s32.totalorder %v812_v59, 1 }
 0x121   : > { %v781_v29 = vmax.f32 %v779_v2, %v780_v8  ;;  %v852_v7 = vsel %vm836_vm6, %v1643_v60, -3.4028235e+38  ;;  %v858_v14 = vsel %vm842_vm7, %v1608_v50, -3.4028235e+38  ;;  %1405 = vset.pattern.permute.xlu1 %v1426_v43 }
 0x122   : > { %v868_v63 = vmax.f32 %v852_v7, %v856_v22  ;;  %v870_v3 = vmax.f32 %v866_v39, %v858_v14  ;;  %1025 = vperm.xlu1 %1405, %v1536_v32  }
 0x123   : > { %v782_v27 = vrot.slane %v781_v29, 2  ;;  %v797_v17 = vpop.permute.xlu1 %796  ;;  %v818_v46 = vpop.permute.xlu0 %817 }
 0x124   : > { %vm844_vm9 = vcmp.eq.s32.totalorder %v818_v46, 1  ;;  %vm837_vm13 = vcmp.eq.s32.totalorder %v797_v17, 1 }
 0x125   : > { %v783_v18 = vmax.f32 %v781_v29, %v782_v27  ;;  %v860_v37 = vsel %vm844_vm9, %v1598_v47, -3.4028235e+38  ;;  %v853_v11 = vsel %vm837_vm13, %v1637_v58, -3.4028235e+38  ;;  %vm1196_vm9 = vcmask 1043456  }
 0x126   : > { %v872_v35 = vmax.f32 %v868_v63, %v860_v37  ;;  %1031 = vperm.xlu1 %1405, %v1542_v34  }
 0x127   : > { %v784_v15 = vrot.slane %v783_v18, 1  ;;  %v803_v13 = vpop.permute.xlu1 %802  ;;  %v824_v43 = vpop.permute.xlu0 %823 }
 0x128   : > { %vm839_vm11 = vcmp.eq.s32.totalorder %v803_v13, 1  ;;  %vm846_vm12 = vcmp.eq.s32.totalorder %v824_v43, 1  ;;  %v344_v13 = vpop.f32.mrf.mxu0 }
 0x129   : > { %v785_v32 = vmax.f32 %v783_v18, %v784_v15  ;;  %v855_v30 = vsel %vm839_vm11, %v1624_v55, -3.4028235e+38  ;;  %v862_v25 = vsel %vm846_vm12, %v1585_v44, -3.4028235e+38 }
 0x12a   : > { %v867_v53 = vmax.f32 %v851_v16, %v855_v30  ;;  %v874_v57 = vmax.f32 %v870_v3, %v862_v25  ;;  %1034 = vperm.xlu1 %1405, %v1540_v33  }
 0x12b   : > { %v1881_v49 = vsel %vm1194_vm10, %v1852_v19, %v785_v32  ;;  %v809_v23 = vpop.permute.xlu1 %808  ;;  %v830_v20 = vpop.permute.xlu0 %829 }
 0x12c   : > { %vm841_vm14 = vcmp.eq.s32.totalorder %v809_v23, 1  ;;  %vm848_vm15 = vcmp.eq.s32.totalorder %v830_v20, 1 }
 0x12d   : > { %v857_v40 = vsel %vm841_vm14, %v1614_v52, -3.4028235e+38  ;;  %v864_v0 = vsel %vm848_vm15, %v1573_v41, -3.4028235e+38 }
 0x12e   : > { %v869_v1 = vmax.f32 %v853_v11, %v857_v40  ;;  %v876_v31 = vmax.f32 %v872_v35, %v864_v0  ;;  %1407 = vset.pattern.permute.xlu1 %v1427_v26  ;;  %v277_v35 = vld [vmem:[%s1984_s3] sm:$0xff] }
 0x12f   : > { %1129 = vperm.xlu1 %1407, %v2001_v51   ;;  %v815_v33 = vpop.permute.xlu1 %814  ;;  %v348_v32 = vadd.f32 %v344_v13, %v277_v35 }
 0x130   : > { %vm843_vm0 = vcmp.eq.s32.totalorder %v815_v33, 1  ;;  %v889_v19 = vpop.permute.xlu0 %888 }
 0x131   : > { %v859_v4 = vsel %vm843_vm0, %v1602_v48, -3.4028235e+38  ;;  %vm935_vm6 = vcmp.eq.s32.totalorder %v889_v19, 1  ;;  %349 = vst [vmem:[%s1984_s3] sm:$0xff] %v348_v32 }
 0x132   : > { %v871_v6 = vmax.f32 %v867_v53, %v859_v4  ;;  %v951_v46 = vsel %vm935_vm6, %v1655_v62, -3.4028235e+38 }
 0x133   : > { %1132 = vperm.xlu1 %1407, %v1542_v34   ;;  %v821_v9 = vpop.permute.xlu1 %820 }
 0x134   : > { %vm845_vm1 = vcmp.eq.s32.totalorder %v821_v9, 1  ;;  %v898_v28 = vpop.permute.xlu0 %897 }
 0x135   : > { %v861_v12 = vsel %vm845_vm1, %v1590_v45, -3.4028235e+38  ;;  %vm938_vm11 = vcmp.eq.s32.totalorder %v898_v28, 1 }
 0x136   : > { %v873_v5 = vmax.f32 %v869_v1, %v861_v12 }
 0x137   : > { %v827_v10 = vpop.permute.xlu1 %826 }
 0x138   : > { %vm847_vm2 = vcmp.eq.s32.totalorder %v827_v10, 1  ;;  %v904_v51 = vpop.permute.xlu0 %903 }
 0x139   : > { %v863_v26 = vsel %vm847_vm2, %v1580_v42, -3.4028235e+38  ;;  %vm940_vm4 = vcmp.eq.s32.totalorder %v904_v51, 1 }
 0x13a   : > { %v875_v21 = vmax.f32 %v871_v6, %v863_v26  ;;  %v956_v34 = vsel %vm940_vm4, %v1624_v55, -3.4028235e+38 }
 0x13b   : > { %v833_v2 = vpop.permute.xlu1 %832 }
 0x13c   : > { %v878_v24 = vmax.f32 %v874_v57, %v875_v21  ;;  %vm849_vm3 = vcmp.eq.s32.totalorder %v833_v2, 1  ;;  %v910_v36 = vpop.permute.xlu0 %909  ;;  %v1367_v57 = vpop.f32.mrf.mxu0 }
 0x13d   : > { %v865_v39 = vsel %vm849_vm3, %v1567_v38, -3.4028235e+38  ;;  %vm942_vm12 = vcmp.eq.s32.totalorder %v910_v36, 1 }
 0x13e   : > { %v877_v8 = vmax.f32 %v873_v5, %v865_v39  ;;  %v958_v33 = vsel %vm942_vm12, %v1614_v52, -3.4028235e+38 }
 0x140   : > { %v879_v22 = vmax.f32 %v876_v31, %v877_v8  ;;  %v892_v59 = vpop.permute.xlu1 %891  ;;  %v916_v17 = vpop.permute.xlu0 %915  ;;  %v954_v31 = vsel %vm938_vm11, %v1637_v58, -3.4028235e+38 }
 0x141   : > { %vm936_vm5 = vcmp.eq.s32.totalorder %v892_v59, 1  ;;  %vm944_vm14 = vcmp.eq.s32.totalorder %v916_v17, 1  ;;  %v970_v12 = vmax.f32 %v954_v31, %v958_v33 }
 0x142   : > { %v880_v29 = vmax.f32 %v878_v24, %v879_v22  ;;  %v952_v7 = vsel %vm936_vm5, %v1648_v61, -3.4028235e+38  ;;  %v960_v28 = vsel %vm944_vm14, %v1602_v48, -3.4028235e+38  ;;  %vm1198_vm5 = vcmask 1044480  }
 0x143   : > { %v968_v14 = vmax.f32 %v952_v7, %v956_v34 }
 0x144   : > { %v881_v63 = vrot.slane %v880_v29, 4  ;;  %v895_v3 = vpop.permute.xlu1 %894  ;;  %v922_v25 = vpop.permute.xlu0 %921 }
 0x145   : > { %vm937_vm8 = vcmp.eq.s32.totalorder %v895_v3, 1  ;;  %vm946_vm15 = vcmp.eq.s32.totalorder %v922_v25, 1  ;;  %v972_v2 = vmax.f32 %v968_v14, %v960_v28 }
 0x146   : > { %v882_v27 = vmax.f32 %v880_v29, %v881_v63  ;;  %v953_v20 = vsel %vm937_vm8, %v1643_v60, -3.4028235e+38 }
 0x148   : > { %v883_v18 = vrot.slane %v882_v27, 2  ;;  %v901_v37 = vpop.permute.xlu1 %900  ;;  %v928_v19 = vpop.permute.xlu0 %927 }
 0x149   : > { %vm939_vm7 = vcmp.eq.s32.totalorder %v901_v37, 1  ;;  %vm948_vm0 = vcmp.eq.s32.totalorder %v928_v19, 1 }
 0x14a   : > { %v884_v16 = vmax.f32 %v882_v27, %v883_v18  ;;  %v955_v15 = vsel %vm939_vm7, %v1629_v56, -3.4028235e+38  ;;  %v964_v21 = vsel %vm948_vm0, %v1580_v42, -3.4028235e+38 }
 0x14b   : > { %v967_v43 = vmax.f32 %v951_v46, %v955_v15  ;;  %v976_v34 = vmax.f32 %v972_v2, %v964_v21 }
 0x14c   : > { %v885_v30 = vrot.slane %v884_v16, 1  ;;  %v907_v53 = vpop.permute.xlu1 %906  ;;  %v934_v5 = vpop.permute.xlu0 %933 }
 0x14d   : > { %vm941_vm10 = vcmp.eq.s32.totalorder %v907_v53, 1  ;;  %vm950_vm2 = vcmp.eq.s32.totalorder %v934_v5, 1 }
 0x14e   : > { %v886_v23 = vmax.f32 %v884_v16, %v885_v30  ;;  %v957_v11 = vsel %vm941_vm10, %v1619_v54, -3.4028235e+38  ;;  %v966_v39 = vsel %vm950_vm2, %v1567_v38, -3.4028235e+38 }
 0x14f   : > { %v969_v40 = vmax.f32 %v953_v20, %v957_v11 }
 0x150   : > { %v1197_v0 = vsel %vm1196_vm9, %v1881_v49, %v886_v23  ;;  %v913_v1 = vpop.permute.xlu1 %912  ;;  %v962_v49 = vsel %vm946_vm15, %v1590_v45, -3.4028235e+38 }
 0x151   : > { %vm943_vm13 = vcmp.eq.s32.totalorder %v913_v1, 1  ;;  %v974_v24 = vmax.f32 %v970_v12, %v962_v49  ;;  %v993_v37 = vpop.permute.xlu0 %992 }
 0x152   : > { %v959_v4 = vsel %vm943_vm13, %v1608_v50, -3.4028235e+38  ;;  %vm1037_vm6 = vcmp.eq.s32.totalorder %v993_v37, 1 }
 0x153   : > { %v971_v6 = vmax.f32 %v967_v43, %v959_v4  ;;  %v978_v59 = vmax.f32 %v974_v24, %v966_v39  ;;  %v1053_v5 = vsel %vm1037_vm6, %v1648_v61, -3.4028235e+38 }
 0x154   : > { %v919_v9 = vpop.permute.xlu1 %918 }
 0x155   : > { %vm945_vm1 = vcmp.eq.s32.totalorder %v919_v9, 1  ;;  %v1002_v32 = vpop.permute.xlu0 %1001 }
 0x156   : > { %v961_v10 = vsel %vm945_vm1, %v1598_v47, -3.4028235e+38  ;;  %vm1040_vm7 = vcmp.eq.s32.totalorder %v1002_v32, 1 }
 0x157   : > { %v973_v26 = vmax.f32 %v969_v40, %v961_v10 }
 0x158   : > { %v925_v51 = vpop.permute.xlu1 %924 }
 0x159   : > { %vm947_vm3 = vcmp.eq.s32.totalorder %v925_v51, 1  ;;  %v1008_v57 = vpop.permute.xlu0 %1007 }
 0x15a   : > { %v963_v8 = vsel %vm947_vm3, %v1585_v44, -3.4028235e+38  ;;  %vm1042_vm8 = vcmp.eq.s32.totalorder %v1008_v57, 1 }
 0x15b   : > { %v975_v22 = vmax.f32 %v971_v6, %v963_v8  ;;  %v1058_v21 = vsel %vm1042_vm8, %v1619_v54, -3.4028235e+38 }
 0x15c   : > { %v931_v36 = vpop.permute.xlu1 %930 }
 0x15d   : > { %v979_v29 = vmax.f32 %v975_v22, %v976_v34  ;;  %vm949_vm4 = vcmp.eq.s32.totalorder %v931_v36, 1  ;;  %v1014_v20 = vpop.permute.xlu0 %1013 }
 0x15e   : > { %v965_v7 = vsel %vm949_vm4, %v1573_v41, -3.4028235e+38  ;;  %vm1044_vm10 = vcmp.eq.s32.totalorder %v1014_v20, 1 }
 0x15f   : > { %v977_v63 = vmax.f32 %v973_v26, %v965_v7  ;;  %v1056_v26 = vsel %vm1040_vm7, %v1629_v56, -3.4028235e+38  ;;  %v1060_v2 = vsel %vm1044_vm10, %v1608_v50, -3.4028235e+38 }
 0x161   : > { %v980_v3 = vmax.f32 %v977_v63, %v978_v59  ;;  %v990_v27 = vpop.permute.xlu1 %989  ;;  %v1023_v40 = vpop.permute.xlu0 %1022 }
 0x162   : > { %vm1036_vm9 = vcmp.eq.s32.totalorder %v990_v27, 1  ;;  %vm1047_vm12 = vcmp.eq.s32.totalorder %v1023_v40, 1 }
 0x163   : > { %v981_v17 = vmax.f32 %v979_v29, %v980_v3  ;;  %v1052_v51 = vsel %vm1036_vm9, %v1655_v62, -3.4028235e+38  ;;  %v1063_v39 = vsel %vm1047_vm12, %v1590_v45, -3.4028235e+38 }
 0x164   : > { %v1068_v22 = vmax.f32 %v1052_v51, %v1056_v26 }
 0x165   : > { %v982_v46 = vrot.slane %v981_v17, 4  ;;  %v996_v14 = vpop.permute.xlu1 %995  ;;  %v1029_v33 = vpop.permute.xlu0 %1028 }
 0x166   : > { %vm1038_vm14 = vcmp.eq.s32.totalorder %v996_v14, 1  ;;  %vm1049_vm1 = vcmp.eq.s32.totalorder %v1029_v33, 1  ;;  %v1072_v14 = vmax.f32 %v1068_v22, %v1060_v2 }
 0x167   : > { %v983_v18 = vmax.f32 %v981_v17, %v982_v46  ;;  %v1054_v36 = vsel %vm1038_vm14, %v1643_v60, -3.4028235e+38  ;;  %v1065_v37 = vsel %vm1049_vm1, %v1580_v42, -3.4028235e+38 }
 0x169   : > { %v984_v35 = vrot.slane %v983_v18, 2  ;;  %v999_v16 = vpop.permute.xlu1 %998 }
 0x16a   : > { %v1091_v4 = vpop.permute.xlu0 %1090  ;;  %vm1039_vm15 = vcmp.eq.s32.totalorder %v999_v16, 1 }
 0x16b   : > { %v985_v15 = vmax.f32 %v983_v18, %v984_v35  ;;  %v1055_v59 = vsel %vm1039_vm15, %v1637_v58, -3.4028235e+38  ;;  %vm1137_vm4 = vcmp.eq.s32.totalorder %v1091_v4, 1  ;;  %v1070_v18 = vmax.f32 %v1054_v36, %v1058_v21 }
 0x16c   : > { %v1153_v35 = vsel %vm1137_vm4, %v1655_v62, -3.4028235e+38 }
 0x16d   : > { %v986_v13 = vrot.slane %v985_v15, 1  ;;  %v1005_v43 = vpop.permute.xlu1 %1004 }
 0x16e   : > { %v1100_v9 = vpop.permute.xlu0 %1099  ;;  %vm1041_vm11 = vcmp.eq.s32.totalorder %v1005_v43, 1 }
 0x16f   : > { %v987_v30 = vmax.f32 %v985_v15, %v986_v13  ;;  %v1057_v24 = vsel %vm1041_vm11, %v1624_v55, -3.4028235e+38  ;;  %vm1140_vm2 = vcmp.eq.s32.totalorder %v1100_v9, 1 }
 0x170   : > { %v1069_v29 = vmax.f32 %v1053_v5, %v1057_v24  ;;  %v1156_v27 = vsel %vm1140_vm2, %v1637_v58, -3.4028235e+38 }
 0x171   : > { %v1916_v25 = vsel %vm1198_vm5, %v1197_v0, %v987_v30  ;;  %v1011_v53 = vpop.permute.xlu1 %1010 }
 0x172   : > { %v1106_v28 = vpop.permute.xlu0 %1105  ;;  %vm1043_vm13 = vcmp.eq.s32.totalorder %v1011_v53, 1 }
 0x173   : > { %v1059_v8 = vsel %vm1043_vm13, %v1614_v52, -3.4028235e+38  ;;  %vm1142_vm8 = vcmp.eq.s32.totalorder %v1106_v28, 1 }
 0x174   : > { %v1071_v7 = vmax.f32 %v1055_v59, %v1059_v8  ;;  %v1158_v43 = vsel %vm1142_vm8, %v1624_v55, -3.4028235e+38 }
 0x175   : > { %v1017_v23 = vpop.permute.xlu1 %1016 }
 0x176   : > { %v1112_v10 = vpop.permute.xlu0 %1111  ;;  %vm1045_vm0 = vcmp.eq.s32.totalorder %v1017_v23, 1  ;;  %v1075_v30 = vmax.f32 %v1071_v7, %v1063_v39 }
 0x177   : > { %vm1144_vm3 = vcmp.eq.s32.totalorder %v1112_v10, 1  ;;  %v1061_v63 = vsel %vm1045_vm0, %v1602_v48, -3.4028235e+38 }
 0x178   : > { %v1160_v17 = vsel %vm1144_vm3, %v1614_v52, -3.4028235e+38  ;;  %v1073_v16 = vmax.f32 %v1069_v29, %v1061_v63 }
 0x179   : > { %v1172_v32 = vmax.f32 %v1156_v27, %v1160_v17 }
 0x17a   : > { %v1094_v11 = vpop.permute.xlu1 %1093  ;;  %v1121_v3 = vpop.permute.xlu0 %1120 }
 0x17b   : > { %vm1138_vm7 = vcmp.eq.s32.totalorder %v1094_v11, 1  ;;  %vm1147_vm1 = vcmp.eq.s32.totalorder %v1121_v3, 1 }
 0x17c   : > { %v1154_v58 = vsel %vm1138_vm7, %v1648_v61, -3.4028235e+38  ;;  %v1077_v61 = vmax.f32 %v1073_v16, %v1065_v37  ;;  %v1163_v5 = vsel %vm1147_vm1, %v1598_v47, -3.4028235e+38  ;;  %vm1202_vm7 = vcmask 1046528  }
 0x17d   : > { %v1170_v33 = vmax.f32 %v1154_v58, %v1158_v43 }
 0x17e   : > { %v1918_v1 = vpop.permute.xlu1 %1096  ;;  %v1127_v52 = vpop.permute.xlu0 %1126 }
 0x17f   : > { %vm1139_vm10 = vcmp.eq.s32.totalorder %v1918_v1, 1  ;;  %vm1149_vm2 = vcmp.eq.s32.totalorder %v1127_v52, 1 }
 0x182   : > { %v1920_v31 = vpop.permute.xlu1 %1102  ;;  %v1136_v9 = vpop.permute.xlu0 %1135 }
 0x183   : > { %vm1141_vm11 = vcmp.eq.s32.totalorder %v1920_v31, 1  ;;  %vm1152_vm4 = vcmp.eq.s32.totalorder %v1136_v9, 1 }
 0x184   : > { %v1157_v20 = vsel %vm1141_vm11, %v1629_v56, -3.4028235e+38  ;;  %v1168_v24 = vsel %vm1152_vm4, %v1567_v38, -3.4028235e+38 }
 0x186   : > { %v1922_v19 = vpop.permute.xlu1 %1108 }
 0x187   : > { %vm1143_vm12 = vcmp.eq.s32.totalorder %v1922_v19, 1  ;;  %v1155_v19 = vsel %vm1139_vm10, %v1643_v60, -3.4028235e+38 }
 0x188   : > { %v1159_v11 = vsel %vm1143_vm12, %v1619_v54, -3.4028235e+38 }
 0x189   : > { %v1171_v54 = vmax.f32 %v1155_v19, %v1159_v11 }
 0x18b   : > { %v1020_v6 = vpop.permute.xlu1 %1019  ;;  %v1175_v51 = vmax.f32 %v1171_v54, %v1163_v5 }
 0x18c   : > { %vm1046_vm5 = vcmp.eq.s32.totalorder %v1020_v6, 1 }
 0x18d   : > { %v1062_v15 = vsel %vm1046_vm5, %v1598_v47, -3.4028235e+38 }
 0x18e   : > { %v1074_v57 = vmax.f32 %v1070_v18, %v1062_v15 }
 0x190   : > { %v1924_v12 = vpop.permute.xlu1 %1114 }
 0x191   : > { %vm1145_vm13 = vcmp.eq.s32.totalorder %v1924_v12, 1 }
 0x192   : > { %v1161_v4 = vsel %vm1145_vm13, %v1608_v50, -3.4028235e+38 }
 0x194   : > { %v1926_v0 = vpop.permute.xlu1 %1117 }
 0x195   : > { %vm1146_vm15 = vcmp.eq.s32.totalorder %v1926_v0, 1 }
 0x196   : > { %v1162_v6 = vsel %vm1146_vm15, %v1602_v48, -3.4028235e+38  ;;  %v1165_v48 = vsel %vm1149_vm2, %v1585_v44, -3.4028235e+38 }
 0x197   : > { %v1174_v26 = vmax.f32 %v1170_v33, %v1162_v6 }
 0x198   : > { %v1928_v49 = vpop.permute.xlu1 %1123 }
 0x199   : > { %vm1148_vm0 = vcmp.eq.s32.totalorder %v1928_v49, 1  ;;  %v1169_v49 = vmax.f32 %v1153_v35, %v1157_v20 }
 0x19a   : > { %v1164_v12 = vsel %vm1148_vm0, %v1590_v45, -3.4028235e+38 }
 0x19b   : > { %v1173_v1 = vmax.f32 %v1169_v49, %v1161_v4  ;;  %v1176_v50 = vmax.f32 %v1172_v32, %v1164_v12 }
 0x19d   : > { %v1026_v34 = vpop.permute.xlu1 %1025  ;;  %v1177_v47 = vmax.f32 %v1173_v1, %v1165_v48 }
 0x19e   : > { %vm1048_vm6 = vcmp.eq.s32.totalorder %v1026_v34, 1  ;;  %v1180_v34 = vmax.f32 %v1176_v50, %v1168_v24 }
 0x19f   : > { %v1064_v13 = vsel %vm1048_vm6, %v1585_v44, -3.4028235e+38  ;;  %vm1200_vm6 = vcmask 1045504  }
 0x1a0   : > { %v1076_v23 = vmax.f32 %v1072_v14, %v1064_v13 }
 0x1a1   : > { %v1032_v46 = vpop.permute.xlu1 %1031 }
 0x1a2   : > { %vm1050_vm9 = vcmp.eq.s32.totalorder %v1032_v46, 1  ;;  %v1080_v0 = vmax.f32 %v1076_v23, %v1077_v61 }
 0x1a3   : > { %v1066_v62 = vsel %vm1050_vm9, %v1573_v41, -3.4028235e+38 }
 0x1a4   : > { %v1078_v40 = vmax.f32 %v1074_v57, %v1066_v62 }
 0x1a5   : > { %v1035_v53 = vpop.permute.xlu1 %1034 }
 0x1a6   : > { %vm1051_vm14 = vcmp.eq.s32.totalorder %v1035_v53, 1 }
 0x1a7   : > { %v1067_v55 = vsel %vm1051_vm14, %v1567_v38, -3.4028235e+38 }
 0x1a8   : > { %v1079_v31 = vmax.f32 %v1075_v30, %v1067_v55 }
 0x1aa   : > { %v1081_v28 = vmax.f32 %v1078_v40, %v1079_v31  ;;  %v1130_v56 = vpop.permute.xlu1 %1129 }
 0x1ab   : > { %vm1150_vm3 = vcmp.eq.s32.totalorder %v1130_v56, 1 }
 0x1ac   : > { %v1082_v10 = vmax.f32 %v1080_v0, %v1081_v28  ;;  %v1166_v60 = vsel %vm1150_vm3, %v1580_v42, -3.4028235e+38 }
 0x1ad   : > { %v1178_v2 = vmax.f32 %v1174_v26, %v1166_v60 }
 0x1ae   : > { %v1083_v21 = vrot.slane %v1082_v10, 4  ;;  %v1133_v45 = vpop.permute.xlu1 %1132 }
 0x1af   : > { %vm1151_vm5 = vcmp.eq.s32.totalorder %v1133_v45, 1  ;;  %v1181_v36 = vmax.f32 %v1177_v47, %v1178_v2 }
 0x1b0   : > { %v1084_v39 = vmax.f32 %v1082_v10, %v1083_v21  ;;  %v1167_v8 = vsel %vm1151_vm5, %v1573_v41, -3.4028235e+38  ;;  %v1204_v41 = vld [vmem:[%s1985_s4] sm:$0xff] }
 0x1b1   : > { %v1179_v22 = vmax.f32 %v1175_v51, %v1167_v8 }
 0x1b2   : > { %v1085_v42 = vrot.slane %v1084_v39, 2 }
 0x1b3   : > { %v1182_v59 = vmax.f32 %v1179_v22, %v1180_v34 }
 0x1b4   : > { %v1086_v29 = vmax.f32 %v1084_v39, %v1085_v42 }
 0x1b5   : > { %v1183_v7 = vmax.f32 %v1181_v36, %v1182_v59 }
 0x1b6   : > { %v1087_v63 = vrot.slane %v1086_v29, 1 }
 0x1b7   : > { %v1184_v44 = vrot.slane %v1183_v7, 4 }
 0x1b8   : > { %v1088_v3 = vmax.f32 %v1086_v29, %v1087_v63 }
 0x1b9   : > { %v1185_v27 = vmax.f32 %v1183_v7, %v1184_v44 }
 0x1ba   : > { %v1201_v17 = vsel %vm1200_vm6, %v1916_v25, %v1088_v3 }
 0x1bb   : > { %v1186_v46 = vrot.slane %v1185_v27, 2 }
 0x1bd   : > { %v1187_v38 = vmax.f32 %v1185_v27, %v1186_v46 }
 0x1bf   : > { %v1188_v14 = vrot.slane %v1187_v38, 1 }
 0x1c1   : > { %v1189_v18 = vmax.f32 %v1187_v38, %v1188_v14 }
 0x1c3   : > { %v1203_v37 = vsel %vm1202_vm7, %v1201_v17, %v1189_v18 }
 0x1c4   : > { %v1205_v35 = vmax.f32 %v1204_v41, %v1203_v37 }
 0x1c6   : > { %1206 = vst [vmem:[%s1985_s4] sm:$0xff] %v1205_v35 }
 0x1c7 PF: > { %s15_s15 = sadd.s32 1, %s1414_s15  }
 0x1c8   : > { %p12_p6 = scmp.ge.s32.totalorder %s15_s15, 4  }
 0x1ca   :  { %14 = sbr.rel (!%p12_p6) target bundleno = 1 (0x1), region = 76 }

</bundles_post_ra>
